<compile_context>
chip_gen: v5e
topology: v5e:2x2
jax: 0.10.0
libtpu: 0.0.40
codegen_flags: <defaults>
</compile_context>

<pallas_src>
import numpy as np

import jax
import jax.numpy as jnp
from jax.experimental import pallas as pl
from jax.experimental.pallas import tpu as pltpu


# ------------------------------ Pallas kernel ------------------------------

def _softplus(x):
    # numerically stable softplus, matches F.softplus semantics
    return jnp.where(x > 0.0, x + jnp.log1p(jnp.exp(-x)), jnp.log1p(jnp.exp(x)))


def fused_mi_kernel(xk_ref, cwk_ref, cb_ref,
                    repw_ref, repb_ref,
                    w1f_ref, w1r_ref, b1_ref, w2_ref, b2_ref,
                    o_ref):
    f32 = jnp.float32
    bf16 = jnp.bfloat16

    K, rows, S = xk_ref.shape          # (Cin*2*2, 2B, H2*W2)
    CS = cwk_ref.shape[-1]             # Cout * S  == flattened feature width F
    B = rows // 2
    n_rep = CS // S                    # == Cout

    # ---- conv(2x2, s=2) + bias + ReLU as per-tap channel mixes on the VPU ----
    # xk[k, r, s] is tap k=(ci,kh,kw) of row r=(stream, b); tiling it n_rep
    # times along lanes and multiplying by the per-(k, stream, co) weight slab
    # yields the conv output directly in PyTorch NCHW-flatten lane order.
    xk = xk_ref[...]                                        # (K, 2B, S) f32
    xk_t = jnp.concatenate([xk] * n_rep, axis=-1)           # (K, 2B, CS)
    cw = cwk_ref[...]                                       # (K, 2, CS)
    pre_g = jnp.sum(cw[:, 0:1, :] * xk_t[:, 0:B, :], axis=0)        # (B, CS)
    pre_p = jnp.sum(cw[:, 1:2, :] * xk_t[:, B:2 * B, :], axis=0)    # (B, CS)
    cb = cb_ref[...]                                        # (2, CS)
    feat = jnp.maximum(
        jnp.concatenate([pre_g + cb[0:1, :], pre_p + cb[1:2, :]], axis=0), 0.0)
    feat16 = feat.astype(bf16)                              # rows: [feat_g; feat_p]

    # ---- rep_g and rep_p as ONE MXU matmul (weights concatenated along N) ----
    rep_both = (jnp.dot(feat16, repw_ref[...], preferred_element_type=f32)
                + repb_ref[...])                            # (2B, 2R)
    R = repb_ref.shape[-1] // 2
    rep_g = rep_both[0:B, 0:R]                              # feat_g rows, g cols
    rep_p = rep_both[B:2 * B, R:2 * R]                      # feat_p rows, p cols
    rep_stack = jnp.concatenate([rep_g, rep_p], axis=0)     # (2B, R) = [rep_g; rep_p]
    rep16 = rep_stack.astype(bf16)

    # ---- all statistic dense1 evaluations as 2 matmuls, columns [g | p | gp] --
    a_feat = jnp.dot(feat16, w1f_ref[...], preferred_element_type=f32)   # (2B, 192)
    a_rep = jnp.dot(rep16, w1r_ref[...], preferred_element_type=f32)     # (2B, 192)
    # sta_gp pairs feat_g<->rep_p and feat_p<->rep_g: swap rep row-halves for
    # the gp column block only.
    a_rep_sw = jnp.concatenate([a_rep[B:2 * B], a_rep[0:B]], axis=0)
    n1 = w2_ref.shape[-1] // 3                                           # 64
    rep_term = jnp.concatenate([a_rep[:, 0:2 * n1], a_rep_sw[:, 2 * n1:3 * n1]],
                               axis=-1)
    h = jax.nn.sigmoid(a_feat + rep_term + b1_ref[...])                  # (2B, 192) f32

    # ---- dense2 (64 -> 1) as lane reductions (no N=1 MXU matmul) --------------
    hw = h * w2_ref[...]                                     # (2B, 192)
    chunk_g = jnp.sum(hw[:, 0:n1], axis=-1, keepdims=True)           # (2B, 1)
    chunk_p = jnp.sum(hw[:, n1:2 * n1], axis=-1, keepdims=True)
    chunk_gp = jnp.sum(hw[:, 2 * n1:3 * n1], axis=-1, keepdims=True)

    # b2_ref = [[b2_g + b2_p, b2_gp]]
    T = chunk_g[0:B] + chunk_p[B:2 * B] + b2_ref[0:1, 0:1]            # (B, 1)
    T_prime = 0.5 * (chunk_gp[0:B] + chunk_gp[B:2 * B]) + b2_ref[0:1, 1:2]

    joint_expectation = jnp.mean(-_softplus(-T))
    marginal_expectation = jnp.mean(_softplus(T_prime))
    mutual_info = joint_expectation - marginal_expectation
    o_ref[...] = (-mutual_info) * jnp.ones((1, 1), f32)     # DJSLoss returns -mutual_info


# ------------------------------ forward wrapper -----------------------------

def _conv_taps(x):
    """(B, C, H, W) -> (C*2*2, B, (H/2)*(W/2)) conv-tap views, k = ci*4+kh*2+kw.

    Pure strided reshaping of the (tiny) input; all conv arithmetic happens in
    the fused kernel."""
    B, C, H, W = x.shape
    H2, W2 = H // 2, W // 2
    x6 = x.reshape(B, C, H2, 2, W2, 2)
    return x6.transpose(1, 3, 5, 0, 2, 4).reshape(C * 4, B, H2 * W2)


def mi_forward(fp_h, fg_h, prep):
    xg = _conv_taps(fg_h)
    xp = _conv_taps(fp_h)
    xk = jnp.concatenate([xg, xp], axis=1)      # (K, 2B, S), row halves = [g | p]

    args = (xk,
            prep["conv_wk"], prep["conv_cb"],
            prep["rep_w"], prep["rep_b"],
            prep["sta_w1f"], prep["sta_w1r"], prep["sta_b1"],
            prep["sta_w2"], prep["sta_b2"])

    def full_spec(a):
        nd = a.ndim
        return pl.BlockSpec(a.shape, lambda i, nd=nd: (0,) * nd)

    out = pl.pallas_call(
        fused_mi_kernel,
        out_shape=jax.ShapeDtypeStruct((1, 1), jnp.float32),
        grid=(1,),
        in_specs=[full_spec(a) for a in args],
        out_specs=pl.BlockSpec((1, 1), lambda i: (0, 0)),
        compiler_params=pltpu.CompilerParams(dimension_semantics=("arbitrary",)),
    )(*args)
    return out[0, 0]


# --------------------------- one-time weight prep ---------------------------

def prepare_params(p, midchannel, d):
    """One-time (outside jit) weight re-layout.  B-independent.

    - conv weights -> per-tap / per-stream rows, lane-tiled to (co, spatial)
      flatten order: (K, 2, F) f32 (~32 KiB at C=4, d=16) instead of a ~1 MiB
      98%-zero dense matrix.
    - rep weights concatenated along N -> (F, 512) bf16.
    - statistic dense1 split into feature/rep halves and concatenated along N
      in [g | p | gp] order; dense2 weights concatenated into one (1, 192) row.
    - bf16 only for MXU operands; biases stay f32."""
    C = midchannel
    H2 = W2 = d // 2
    S = H2 * W2
    F = C * S                       # flattened conv-feature width
    prep = {}

    # --- conv: per-tap channel-mix weights, lane order co*S + s ---------------
    def conv_w_rows(w):                                   # (Cout, Cin, 2, 2) -> (K, F)
        wt = w.transpose(1, 2, 3, 0).reshape(C * 4, C)    # rows k=(ci,kh,kw), cols co
        return np.repeat(wt, S, axis=1)                   # lane index co*S + s
    wg_rows = conv_w_rows(np.asarray(p["conv_g_w"], np.float32))
    wp_rows = conv_w_rows(np.asarray(p["conv_p_w"], np.float32))
    prep["conv_wk"] = jnp.asarray(np.stack([wg_rows, wp_rows], axis=1), jnp.float32)  # (K,2,F)
    bg = np.repeat(np.asarray(p["conv_g_b"], np.float32), S)
    bp = np.repeat(np.asarray(p["conv_p_b"], np.float32), S)
    prep["conv_cb"] = jnp.asarray(np.stack([bg, bp], axis=0), jnp.float32)             # (2,F)

    # --- rep_g | rep_p merged along N -----------------------------------------
    rep_w = np.concatenate([np.asarray(p["rep_g_w"], np.float32).T,
                            np.asarray(p["rep_p_w"], np.float32).T], axis=1)           # (F, 512)
    prep["rep_w"] = jnp.asarray(rep_w, jnp.bfloat16)
    rep_b = np.concatenate([np.asarray(p["rep_g_b"], np.float32),
                            np.asarray(p["rep_p_b"], np.float32)])
    prep["rep_b"] = jnp.asarray(rep_b, jnp.float32).reshape(1, -1)                     # (1, 512)

    # --- statistic nets: split dense1, merge the three nets along N -----------
    w1f, w1r, b1, w2, b2 = [], [], [], [], {}
    for name in ("sta_g", "sta_p", "sta_gp"):
        w1 = np.asarray(p[f"{name}_w1"], np.float32)      # (64, F + 256)
        w1f.append(w1[:, :F].T)                           # (F, 64)
        w1r.append(w1[:, F:].T)                           # (256, 64)
        b1.append(np.asarray(p[f"{name}_b1"], np.float32))
        w2.append(np.asarray(p[f"{name}_w2"], np.float32).reshape(-1))
        b2[name] = float(np.asarray(p[f"{name}_b2"], np.float32).reshape(()))
    prep["sta_w1f"] = jnp.asarray(np.concatenate(w1f, axis=1), jnp.bfloat16)   # (F, 192)
    prep["sta_w1r"] = jnp.asarray(np.concatenate(w1r, axis=1), jnp.bfloat16)   # (256, 192)
    prep["sta_b1"] = jnp.asarray(np.concatenate(b1), jnp.float32).reshape(1, -1)   # (1, 192)
    prep["sta_w2"] = jnp.asarray(np.concatenate(w2), jnp.float32).reshape(1, -1)   # (1, 192)
    prep["sta_b2"] = jnp.asarray([[b2["sta_g"] + b2["sta_p"], b2["sta_gp"]]],
                                 jnp.float32)                                      # (1, 2)
    return prep


# ------------------------- deterministic synthetic init ---------------------

def init_params(key, midchannel, d):
    """PyTorch-style uniform(-1/sqrt(fan_in), +1/sqrt(fan_in)) init, PyTorch layouts."""
    flat_half = midchannel * (d // 2) ** 2
    sta_in = flat_half + 256

    def u(k, shape, fan_in):
        bound = 1.0 / jnp.sqrt(float(fan_in))
        return jax.random.uniform(k, shape, jnp.float32, -bound, bound)

    keys = jax.random.split(key, 24)
    ki = iter(keys)
    params = {}
    for name in ("conv_p", "conv_g"):
        params[f"{name}_w"] = u(next(ki), (midchannel, midchannel, 2, 2), midchannel * 4)
        params[f"{name}_b"] = u(next(ki), (midchannel,), midchannel * 4)
    for name in ("rep_p", "rep_g"):
        params[f"{name}_w"] = u(next(ki), (256, flat_half), flat_half)
        params[f"{name}_b"] = u(next(ki), (256,), flat_half)
    for name in ("sta_g", "sta_p", "sta_gp"):
        params[f"{name}_w1"] = u(next(ki), (64, sta_in), sta_in)
        params[f"{name}_b1"] = u(next(ki), (64,), sta_in)
        params[f"{name}_w2"] = u(next(ki), (1, 64), 64)
        params[f"{name}_b2"] = u(next(ki), (1,), 64)
    return params


if __name__ == "__main__":
    B, midchannel, d = 2, 4, 16
    key = jax.random.PRNGKey(0)
    k_fp, k_fg, k_params = jax.random.split(key, 3)

    fp_h = jax.random.normal(k_fp, (B, midchannel, d, d), jnp.float32)
    fg_h = jax.random.normal(k_fg, (B, midchannel, d, d), jnp.float32)
    params = init_params(k_params, midchannel, d)
    prep = prepare_params(params, midchannel, d)     # one-time weight re-layout

    mi_value = jax.jit(mi_forward)(fp_h, fg_h, prep)
    jax.block_until_ready(mi_value)

    print("KERNEL_OK")
</pallas_src>

<mosaic_0001>
module attributes {stable_mosaic.version = 11 : i64} {
  func.func @fused_mi_kernel(%arg0: i32, %arg1: memref<16x4x64xf32, #tpu.memory_space<vmem>>, %arg2: memref<16x2x256xf32, #tpu.memory_space<vmem>>, %arg3: memref<2x256xf32, #tpu.memory_space<vmem>>, %arg4: memref<256x512xbf16, #tpu.memory_space<vmem>>, %arg5: memref<1x512xf32, #tpu.memory_space<vmem>>, %arg6: memref<256x192xbf16, #tpu.memory_space<vmem>>, %arg7: memref<256x192xbf16, #tpu.memory_space<vmem>>, %arg8: memref<1x192xf32, #tpu.memory_space<vmem>>, %arg9: memref<1x192xf32, #tpu.memory_space<vmem>>, %arg10: memref<1x2xf32, #tpu.memory_space<vmem>>, %arg11: memref<1x1xf32, #tpu.memory_space<vmem>>) attributes {dimension_semantics = [#tpu.dimension_semantics<arbitrary>], iteration_bounds = array<i64: 1>, scalar_prefetch = 0 : i64, scratch_operands = 0 : i64, tpu.core_type = #tpu.core_type<tc>, window_params = [{pipeline_mode = #tpu.pipeline_mode<synchronous>, transform_indices = @transform_0, window_bounds = array<i64: 16, 4, 64>}, {pipeline_mode = #tpu.pipeline_mode<synchronous>, transform_indices = @transform_1, window_bounds = array<i64: 16, 2, 256>}, {pipeline_mode = #tpu.pipeline_mode<synchronous>, transform_indices = @transform_2, window_bounds = array<i64: 2, 256>}, {pipeline_mode = #tpu.pipeline_mode<synchronous>, transform_indices = @transform_3, window_bounds = array<i64: 256, 512>}, {pipeline_mode = #tpu.pipeline_mode<synchronous>, transform_indices = @transform_4, window_bounds = array<i64: 1, 512>}, {pipeline_mode = #tpu.pipeline_mode<synchronous>, transform_indices = @transform_5, window_bounds = array<i64: 256, 192>}, {pipeline_mode = #tpu.pipeline_mode<synchronous>, transform_indices = @transform_6, window_bounds = array<i64: 256, 192>}, {pipeline_mode = #tpu.pipeline_mode<synchronous>, transform_indices = @transform_7, window_bounds = array<i64: 1, 192>}, {pipeline_mode = #tpu.pipeline_mode<synchronous>, transform_indices = @transform_8, window_bounds = array<i64: 1, 192>}, {pipeline_mode = #tpu.pipeline_mode<synchronous>, transform_indices = @transform_9, window_bounds = array<i64: 1, 2>}, {pipeline_mode = #tpu.pipeline_mode<synchronous>, transform_indices = @transform_10, window_bounds = array<i64: 1, 1>}]} {
    %c0 = arith.constant 0 : index
    %c0_0 = arith.constant 0 : index
    %c0_1 = arith.constant 0 : index
    %0 = vector.load %arg1[%c0, %c0_0, %c0_1] : memref<16x4x64xf32, #tpu.memory_space<vmem>>, vector<16x4x64xf32>
    %1 = tpu.concatenate %0, %0, %0, %0 in 2 : vector<16x4x64xf32>, vector<16x4x64xf32>, vector<16x4x64xf32>, vector<16x4x64xf32> -> vector<16x4x256xf32>
    %c0_2 = arith.constant 0 : index
    %c0_3 = arith.constant 0 : index
    %c0_4 = arith.constant 0 : index
    %2 = vector.load %arg2[%c0_2, %c0_3, %c0_4] : memref<16x2x256xf32, #tpu.memory_space<vmem>>, vector<16x2x256xf32>
    %3 = vector.extract_strided_slice %2 {offsets = [0, 0, 0], sizes = [16, 1, 256], strides = [1, 1, 1]} : vector<16x2x256xf32> to vector<16x1x256xf32>
    %4 = vector.extract_strided_slice %1 {offsets = [0, 0, 0], sizes = [16, 2, 256], strides = [1, 1, 1]} : vector<16x4x256xf32> to vector<16x2x256xf32>
    %5 = vector.broadcast %3 : vector<16x1x256xf32> to vector<16x2x256xf32>
    %6 = arith.mulf %5, %4 : vector<16x2x256xf32>
    %cst = arith.constant dense<0.000000e+00> : vector<2x256xf32>
    %7 = vector.multi_reduction <add>, %6, %cst [0] : vector<16x2x256xf32> to vector<2x256xf32>
    %8 = vector.extract_strided_slice %2 {offsets = [0, 1, 0], sizes = [16, 1, 256], strides = [1, 1, 1]} : vector<16x2x256xf32> to vector<16x1x256xf32>
    %9 = vector.extract_strided_slice %1 {offsets = [0, 2, 0], sizes = [16, 2, 256], strides = [1, 1, 1]} : vector<16x4x256xf32> to vector<16x2x256xf32>
    %10 = vector.broadcast %8 : vector<16x1x256xf32> to vector<16x2x256xf32>
    %11 = arith.mulf %10, %9 : vector<16x2x256xf32>
    %cst_5 = arith.constant dense<0.000000e+00> : vector<2x256xf32>
    %12 = vector.multi_reduction <add>, %11, %cst_5 [0] : vector<16x2x256xf32> to vector<2x256xf32>
    %c0_6 = arith.constant 0 : index
    %c0_7 = arith.constant 0 : index
    %13 = vector.load %arg3[%c0_6, %c0_7] : memref<2x256xf32, #tpu.memory_space<vmem>>, vector<2x256xf32>
    %14 = vector.extract_strided_slice %13 {offsets = [0, 0], sizes = [1, 256], strides = [1, 1]} : vector<2x256xf32> to vector<1x256xf32>
    %15 = vector.broadcast %14 : vector<1x256xf32> to vector<2x256xf32>
    %16 = arith.addf %7, %15 : vector<2x256xf32>
    %17 = vector.extract_strided_slice %13 {offsets = [1, 0], sizes = [1, 256], strides = [1, 1]} : vector<2x256xf32> to vector<1x256xf32>
    %18 = vector.broadcast %17 : vector<1x256xf32> to vector<2x256xf32>
    %19 = arith.addf %12, %18 : vector<2x256xf32>
    %20 = tpu.concatenate %16, %19 in 0 : vector<2x256xf32>, vector<2x256xf32> -> vector<4x256xf32>
    %cst_8 = arith.constant 0.000000e+00 : f32
    %21 = vector.broadcast %cst_8 : f32 to vector<4x256xf32>
    %22 = arith.maximumf %20, %21 : vector<4x256xf32>
    %23 = arith.truncf %22 : vector<4x256xf32> to vector<4x256xbf16>
    %c0_9 = arith.constant 0 : index
    %c0_10 = arith.constant 0 : index
    %24 = vector.load %arg4[%c0_9, %c0_10] : memref<256x512xbf16, #tpu.memory_space<vmem>>, vector<256x512xbf16>
    %cst_11 = arith.constant dense<0.000000e+00> : vector<4x512xf32>
    %25 = tpu.matmul %23, %24, %cst_11 {dimension_numbers = #tpu.dot_dimension_numbers<[1], [0], [0], [1], [0, 0, 1, 1], [], []>} : vector<4x256xbf16>, vector<256x512xbf16>, vector<4x512xf32> -> vector<4x512xf32>
    %c0_12 = arith.constant 0 : index
    %c0_13 = arith.constant 0 : index
    %26 = vector.load %arg5[%c0_12, %c0_13] : memref<1x512xf32, #tpu.memory_space<vmem>>, vector<1x512xf32>
    %27 = vector.broadcast %26 : vector<1x512xf32> to vector<4x512xf32>
    %28 = arith.addf %25, %27 : vector<4x512xf32>
    %29 = vector.extract_strided_slice %28 {offsets = [0, 0], sizes = [2, 256], strides = [1, 1]} : vector<4x512xf32> to vector<2x256xf32>
    %30 = vector.extract_strided_slice %28 {offsets = [2, 256], sizes = [2, 256], strides = [1, 1]} : vector<4x512xf32> to vector<2x256xf32>
    %31 = tpu.concatenate %29, %30 in 0 : vector<2x256xf32>, vector<2x256xf32> -> vector<4x256xf32>
    %32 = arith.truncf %31 : vector<4x256xf32> to vector<4x256xbf16>
    %c0_14 = arith.constant 0 : index
    %c0_15 = arith.constant 0 : index
    %33 = vector.load %arg6[%c0_14, %c0_15] : memref<256x192xbf16, #tpu.memory_space<vmem>>, vector<256x192xbf16>
    %cst_16 = arith.constant dense<0.000000e+00> : vector<4x192xf32>
    %34 = tpu.matmul %23, %33, %cst_16 {dimension_numbers = #tpu.dot_dimension_numbers<[1], [0], [0], [1], [0, 0, 1, 1], [], []>} : vector<4x256xbf16>, vector<256x192xbf16>, vector<4x192xf32> -> vector<4x192xf32>
    %c0_17 = arith.constant 0 : index
    %c0_18 = arith.constant 0 : index
    %35 = vector.load %arg7[%c0_17, %c0_18] : memref<256x192xbf16, #tpu.memory_space<vmem>>, vector<256x192xbf16>
    %cst_19 = arith.constant dense<0.000000e+00> : vector<4x192xf32>
    %36 = tpu.matmul %32, %35, %cst_19 {dimension_numbers = #tpu.dot_dimension_numbers<[1], [0], [0], [1], [0, 0, 1, 1], [], []>} : vector<4x256xbf16>, vector<256x192xbf16>, vector<4x192xf32> -> vector<4x192xf32>
    %37 = vector.extract_strided_slice %36 {offsets = [2, 0], sizes = [2, 192], strides = [1, 1]} : vector<4x192xf32> to vector<2x192xf32>
    %38 = vector.extract_strided_slice %36 {offsets = [0, 0], sizes = [2, 192], strides = [1, 1]} : vector<4x192xf32> to vector<2x192xf32>
    %39 = tpu.concatenate %37, %38 in 0 : vector<2x192xf32>, vector<2x192xf32> -> vector<4x192xf32>
    %40 = vector.extract_strided_slice %36 {offsets = [0, 0], sizes = [4, 128], strides = [1, 1]} : vector<4x192xf32> to vector<4x128xf32>
    %41 = vector.extract_strided_slice %39 {offsets = [0, 128], sizes = [4, 64], strides = [1, 1]} : vector<4x192xf32> to vector<4x64xf32>
    %42 = tpu.concatenate %40, %41 in 1 : vector<4x128xf32>, vector<4x64xf32> -> vector<4x192xf32>
    %43 = arith.addf %34, %42 : vector<4x192xf32>
    %c0_20 = arith.constant 0 : index
    %c0_21 = arith.constant 0 : index
    %44 = vector.load %arg8[%c0_20, %c0_21] : memref<1x192xf32, #tpu.memory_space<vmem>>, vector<1x192xf32>
    %45 = vector.broadcast %44 : vector<1x192xf32> to vector<4x192xf32>
    %46 = arith.addf %43, %45 : vector<4x192xf32>
    %47 = arith.negf %46 : vector<4x192xf32>
    %48 = math.exp %47 : vector<4x192xf32>
    %cst_22 = arith.constant 1.000000e+00 : f32
    %49 = vector.broadcast %cst_22 : f32 to vector<4x192xf32>
    %50 = arith.addf %49, %48 : vector<4x192xf32>
    %51 = arith.divf %49, %50 : vector<4x192xf32>
    %c0_23 = arith.constant 0 : index
    %c0_24 = arith.constant 0 : index
    %52 = vector.load %arg9[%c0_23, %c0_24] : memref<1x192xf32, #tpu.memory_space<vmem>>, vector<1x192xf32>
    %53 = vector.broadcast %52 : vector<1x192xf32> to vector<4x192xf32>
    %54 = arith.mulf %51, %53 : vector<4x192xf32>
    %55 = vector.extract_strided_slice %54 {offsets = [0, 0], sizes = [4, 64], strides = [1, 1]} : vector<4x192xf32> to vector<4x64xf32>
    %cst_25 = arith.constant dense<0.000000e+00> : vector<4xf32>
    %56 = vector.multi_reduction <add>, %55, %cst_25 [1] : vector<4x64xf32> to vector<4xf32>
    %57 = vector.shape_cast %56 : vector<4xf32> to vector<4x1xf32>
    %58 = vector.extract_strided_slice %54 {offsets = [0, 64], sizes = [4, 64], strides = [1, 1]} : vector<4x192xf32> to vector<4x64xf32>
    %cst_26 = arith.constant dense<0.000000e+00> : vector<4xf32>
    %59 = vector.multi_reduction <add>, %58, %cst_26 [1] : vector<4x64xf32> to vector<4xf32>
    %60 = vector.shape_cast %59 : vector<4xf32> to vector<4x1xf32>
    %61 = vector.extract_strided_slice %54 {offsets = [0, 128], sizes = [4, 64], strides = [1, 1]} : vector<4x192xf32> to vector<4x64xf32>
    %cst_27 = arith.constant dense<0.000000e+00> : vector<4xf32>
    %62 = vector.multi_reduction <add>, %61, %cst_27 [1] : vector<4x64xf32> to vector<4xf32>
    %63 = vector.shape_cast %62 : vector<4xf32> to vector<4x1xf32>
    %64 = vector.extract_strided_slice %57 {offsets = [0, 0], sizes = [2, 1], strides = [1, 1]} : vector<4x1xf32> to vector<2x1xf32>
    %65 = vector.extract_strided_slice %60 {offsets = [2, 0], sizes = [2, 1], strides = [1, 1]} : vector<4x1xf32> to vector<2x1xf32>
    %66 = arith.addf %64, %65 : vector<2x1xf32>
    %c0_28 = arith.constant 0 : index
    %c0_29 = arith.constant 0 : index
    %67 = vector.load %arg10[%c0_28, %c0_29] : memref<1x2xf32, #tpu.memory_space<vmem>>, vector<1x1xf32>
    %68 = vector.broadcast %67 : vector<1x1xf32> to vector<2x1xf32>
    %69 = arith.addf %66, %68 : vector<2x1xf32>
    %70 = vector.extract_strided_slice %63 {offsets = [0, 0], sizes = [2, 1], strides = [1, 1]} : vector<4x1xf32> to vector<2x1xf32>
    %71 = vector.extract_strided_slice %63 {offsets = [2, 0], sizes = [2, 1], strides = [1, 1]} : vector<4x1xf32> to vector<2x1xf32>
    %72 = arith.addf %70, %71 : vector<2x1xf32>
    %cst_30 = arith.constant 5.000000e-01 : f32
    %73 = vector.broadcast %cst_30 : f32 to vector<2x1xf32>
    %74 = arith.mulf %73, %72 : vector<2x1xf32>
    %c0_31 = arith.constant 0 : index
    %c1 = arith.constant 1 : index
    %75 = vector.load %arg10[%c0_31, %c1] : memref<1x2xf32, #tpu.memory_space<vmem>>, vector<1x1xf32>
    %76 = vector.broadcast %75 : vector<1x1xf32> to vector<2x1xf32>
    %77 = arith.addf %74, %76 : vector<2x1xf32>
    %cst_32 = arith.constant 0.000000e+00 : f32
    %78 = vector.broadcast %cst_32 : f32 to vector<2x1xf32>
    %79 = arith.subf %78, %69 : vector<2x1xf32>
    %cst_33 = arith.constant 0.000000e+00 : f32
    %80 = vector.broadcast %cst_33 : f32 to vector<2x1xf32>
    %81 = arith.cmpf ogt, %79, %80 : vector<2x1xf32>
    %cst_34 = arith.constant 0.000000e+00 : f32
    %82 = vector.broadcast %cst_34 : f32 to vector<2x1xf32>
    %83 = arith.subf %82, %79 : vector<2x1xf32>
    %84 = math.exp %83 : vector<2x1xf32>
    %85 = math.log1p %84 : vector<2x1xf32>
    %86 = arith.addf %79, %85 : vector<2x1xf32>
    %87 = math.exp %79 : vector<2x1xf32>
    %88 = math.log1p %87 : vector<2x1xf32>
    %89 = arith.select %81, %86, %88 : vector<2x1xi1>, vector<2x1xf32>
    %cst_35 = arith.constant 0.000000e+00 : f32
    %90 = vector.broadcast %cst_35 : f32 to vector<2x1xf32>
    %91 = arith.subf %90, %89 : vector<2x1xf32>
    %92 = vector.shape_cast %91 : vector<2x1xf32> to vector<1x2x1xf32>
    %cst_36 = arith.constant dense<0.000000e+00> : vector<1xf32>
    %93 = vector.multi_reduction <add>, %92, %cst_36 [1, 2] : vector<1x2x1xf32> to vector<1xf32>
    %94 = vector.shape_cast %93 : vector<1xf32> to vector<1x1x1xf32>
    %95 = vector.extract %94[0, 0, 0] : f32 from vector<1x1x1xf32>
    %cst_37 = arith.constant 2.000000e+00 : f32
    %96 = arith.divf %95, %cst_37 : f32
    %cst_38 = arith.constant 0.000000e+00 : f32
    %97 = vector.broadcast %cst_38 : f32 to vector<2x1xf32>
    %98 = arith.cmpf ogt, %77, %97 : vector<2x1xf32>
    %cst_39 = arith.constant 0.000000e+00 : f32
    %99 = vector.broadcast %cst_39 : f32 to vector<2x1xf32>
    %100 = arith.subf %99, %77 : vector<2x1xf32>
    %101 = math.exp %100 : vector<2x1xf32>
    %102 = math.log1p %101 : vector<2x1xf32>
    %103 = arith.addf %77, %102 : vector<2x1xf32>
    %104 = math.exp %77 : vector<2x1xf32>
    %105 = math.log1p %104 : vector<2x1xf32>
    %106 = arith.select %98, %103, %105 : vector<2x1xi1>, vector<2x1xf32>
    %107 = vector.shape_cast %106 : vector<2x1xf32> to vector<1x2x1xf32>
    %cst_40 = arith.constant dense<0.000000e+00> : vector<1xf32>
    %108 = vector.multi_reduction <add>, %107, %cst_40 [1, 2] : vector<1x2x1xf32> to vector<1xf32>
    %109 = vector.shape_cast %108 : vector<1xf32> to vector<1x1x1xf32>
    %110 = vector.extract %109[0, 0, 0] : f32 from vector<1x1x1xf32>
    %cst_41 = arith.constant 2.000000e+00 : f32
    %111 = arith.divf %110, %cst_41 : f32
    %112 = arith.subf %96, %111 : f32
    %cst_42 = arith.constant 0.000000e+00 : f32
    %113 = arith.subf %cst_42, %112 : f32
    %cst_43 = arith.constant 1.000000e+00 : f32
    %114 = vector.broadcast %cst_43 : f32 to vector<1x1xf32>
    %115 = vector.broadcast %113 : f32 to vector<1x1xf32>
    %116 = arith.mulf %115, %114 : vector<1x1xf32>
    %c0_44 = arith.constant 0 : index
    %c0_45 = arith.constant 0 : index
    %117 = vector.load %arg11[%c0_44, %c0_45] : memref<1x1xf32, #tpu.memory_space<vmem>>, vector<1x1xf32>
    tpu.vector_store %arg11[%c0_44, %c0_45], %116 {strides = array<i32>} : memref<1x1xf32, #tpu.memory_space<vmem>>, vector<1x1xf32>,
    return
  }
  func.func @transform_0(%arg0: i32) -> (i32, i32, i32) {
    %c0_i32 = arith.constant 0 : i32
    %c0_i32_0 = arith.constant 0 : i32
    %c0_i32_1 = arith.constant 0 : i32
    %c0_i32_2 = arith.constant 0 : i32
    return %c0_i32, %c0_i32_0, %c0_i32_1 : i32, i32, i32
  }
  func.func @transform_1(%arg0: i32) -> (i32, i32, i32) {
    %c0_i32 = arith.constant 0 : i32
    %c0_i32_0 = arith.constant 0 : i32
    %c0_i32_1 = arith.constant 0 : i32
    %c0_i32_2 = arith.constant 0 : i32
    return %c0_i32, %c0_i32_0, %c0_i32_1 : i32, i32, i32
  }
  func.func @transform_2(%arg0: i32) -> (i32, i32) {
    %c0_i32 = arith.constant 0 : i32
    %c0_i32_0 = arith.constant 0 : i32
    %c0_i32_1 = arith.constant 0 : i32
    return %c0_i32, %c0_i32_0 : i32, i32
  }
  func.func @transform_3(%arg0: i32) -> (i32, i32) {
    %c0_i32 = arith.constant 0 : i32
    %c0_i32_0 = arith.constant 0 : i32
    %c0_i32_1 = arith.constant 0 : i32
    return %c0_i32, %c0_i32_0 : i32, i32
  }
  func.func @transform_4(%arg0: i32) -> (i32, i32) {
    %c0_i32 = arith.constant 0 : i32
    %c0_i32_0 = arith.constant 0 : i32
    %c0_i32_1 = arith.constant 0 : i32
    return %c0_i32, %c0_i32_0 : i32, i32
  }
  func.func @transform_5(%arg0: i32) -> (i32, i32) {
    %c0_i32 = arith.constant 0 : i32
    %c0_i32_0 = arith.constant 0 : i32
    %c0_i32_1 = arith.constant 0 : i32
    return %c0_i32, %c0_i32_0 : i32, i32
  }
  func.func @transform_6(%arg0: i32) -> (i32, i32) {
    %c0_i32 = arith.constant 0 : i32
    %c0_i32_0 = arith.constant 0 : i32
    %c0_i32_1 = arith.constant 0 : i32
    return %c0_i32, %c0_i32_0 : i32, i32
  }
  func.func @transform_7(%arg0: i32) -> (i32, i32) {
    %c0_i32 = arith.constant 0 : i32
    %c0_i32_0 = arith.constant 0 : i32
    %c0_i32_1 = arith.constant 0 : i32
    return %c0_i32, %c0_i32_0 : i32, i32
  }
  func.func @transform_8(%arg0: i32) -> (i32, i32) {
    %c0_i32 = arith.constant 0 : i32
    %c0_i32_0 = arith.constant 0 : i32
    %c0_i32_1 = arith.constant 0 : i32
    return %c0_i32, %c0_i32_0 : i32, i32
  }
  func.func @transform_9(%arg0: i32) -> (i32, i32) {
    %c0_i32 = arith.constant 0 : i32
    %c0_i32_0 = arith.constant 0 : i32
    %c0_i32_1 = arith.constant 0 : i32
    return %c0_i32, %c0_i32_0 : i32, i32
  }
  func.func @transform_10(%arg0: i32) -> (i32, i32) {
    %c0_i32 = arith.constant 0 : i32
    %c0_i32_0 = arith.constant 0 : i32
    %c0_i32_1 = arith.constant 0 : i32
    return %c0_i32, %c0_i32_0 : i32, i32
  }
}

</mosaic_0001>

<bundles_post_ra>
// kernel: mi_forward.1
= control target key start
LH: loop header
LB: loop body
LE: loop exit
PB: predicated region body
PF: predicated region fallthrough
CT: control target
= control target key end

     0   :  { %s2473_s17 = smov 64   ;;  %s3745_s0 = inlined_call_operand.vmem [shape: f32[16,4,64], index: 0, kind: input, shape index: {}]   ;;  %s3746_s1 = inlined_call_operand.vmem [shape: f32[16,2,256], index: 1, kind: input, shape index: {}]   ;;  %s3747_s2 = inlined_call_operand.vmem [shape: f32[2,256], index: 2, kind: input, shape index: {}]   ;;  %s3748_s3 = inlined_call_operand.vmem [shape: bf16[256,512], index: 3, kind: input, shape index: {}]   ;;  %s3749_s4 = inlined_call_operand.vmem [shape: f32[1,512], index: 4, kind: input, shape index: {}]   ;;  %s3750_s5 = inlined_call_operand.vmem [shape: bf16[256,192], index: 5, kind: input, shape index: {}]   ;;  %s3751_s6 = inlined_call_operand.vmem [shape: bf16[256,192], index: 6, kind: input, shape index: {}]   ;;  %s3752_s7 = inlined_call_operand.vmem [shape: f32[1,192], index: 7, kind: input, shape index: {}]   ;;  %s3753_s8 = inlined_call_operand.vmem [shape: f32[1,192], index: 8, kind: input, shape index: {}]   ;;  %s3754_s9 = inlined_call_operand.vmem [shape: f32[1,2], index: 9, kind: input, shape index: {}]   ;;  %s3755_s10 = inlined_call_operand.hbm [shape: f32[1,1], index: 10, kind: output, shape index: {}]  }
   0x1   :  { %v2535_v0 = vld [vmem:[%s3745_s0] sm:$0xf]  ;;  %v2540_v1 = vld [vmem:[%s3745_s0 + $0x8] sm:$0xf]  ;;  %v2549_v2 = vld [vmem:[%s3745_s0 + $0x10] sm:$0xf] }
   0x2   :  { %68 = vrot.lane.b32.xlu0 %v2535_v0, %s2473_s17  ;;  %72 = vrot.lane.b32.xlu1 %v2540_v1, %s2473_s17 }
   0x3   :  { %76 = vrot.lane.b32.xlu2 %v2549_v2, %s2473_s17 }
   0x4   :  { %15 = vsyncpa [#allocation3], 0  ;;  %v2556_v3 = vld [vmem:[%s3745_s0 + $0x4] sm:$0xf]  ;;  %v2561_v4 = vld [vmem:[%s3745_s0 + $0xc] sm:$0xf] }
   0x5   :  { %v2570_v5 = vld [vmem:[%s3745_s0 + $0x14] sm:$0xf]  ;;  %v2577_v6 = vld [vmem:[%s3745_s0 + $0x18] sm:$0xf]  ;;  %v2582_v7 = vld [vmem:[%s3745_s0 + $0x1c] sm:$0xf] }
   0x6   :  { %v2591_v8 = vld [vmem:[%s3745_s0 + $0x20] sm:$0xf]  ;;  %v2598_v9 = vld [vmem:[%s3745_s0 + $0x24] sm:$0xf]  ;;  %v2603_v10 = vld [vmem:[%s3745_s0 + $0x28] sm:$0xf] }
   0x7   :  { %v2612_v11 = vld [vmem:[%s3745_s0 + $0x2c] sm:$0xf]  ;;  %v2619_v12 = vld [vmem:[%s3745_s0 + $0x30] sm:$0xf]  ;;  %v2624_v13 = vld [vmem:[%s3745_s0 + $0x34] sm:$0xf] }
   0x8   :  { %3760 = vst [vmem:[#allocation5_spill] sm:$0xff] %v2612_v11  ;;  %v2633_v14 = vld [vmem:[%s3745_s0 + $0x38] sm:$0xf]  ;;  %v51_v15 = vld [vmem:[%s3745_s0 + $0x3c] sm:$0xf]  ;;  %vm116_vm0 = vcmask 523264  }
   0x9   :  { %3761 = vst [vmem:[#allocation6_spill] sm:$0xff] %v2619_v12  ;;  %v133_v16 = vld [vmem:[%s3746_s1] sm:$0xf]  ;;  %v135_v21 = vld [vmem:[%s3746_s1 + $0x8] sm:$0xf]  ;;  %vm293_vm1 = vcmask 1041408  }
   0xa   :  { %70 = vrot.lane.b32.xlu0 %v2556_v3, %s2473_s17  ;;  %74 = vrot.lane.b32.xlu1 %v2561_v4, %s2473_s17  ;;  %3762 = vst [vmem:[#allocation7_spill] sm:$0xff] %v2624_v13  ;;  %v165_v17 = vperm.slane %v133_v16, 0  ;;  %v166_v18 = vperm.slane %v133_v16, 2  ;;  %v356_v19 = vperm.slane %v133_v16, 1  ;;  %v357_v20 = vperm.slane %v133_v16, 3  ;;  %s2474_s18 = smov 127  }
   0xb   :  { %78 = vrot.lane.b32.xlu2 %v2570_v5, %s2473_s17  ;;  %3763 = vst [vmem:[#allocation8_spill] sm:$0xff] %v2633_v14  ;;  %v169_v22 = vperm.slane %v135_v21, 0  ;;  %v170_v23 = vperm.slane %v135_v21, 2  ;;  %v360_v24 = vperm.slane %v135_v21, 1  ;;  %v361_v25 = vperm.slane %v135_v21, 3  ;;  %s2476_s26 = smov [#allocation2]  }
   0xc   :  { %v2647_v26 = vperm.slane %v165_v17, 0  ;;  %v137_v27 = vld [vmem:[%s3746_s1 + $0x10] sm:$0xf]  ;;  %v2652_v28 = vperm.slane %v166_v18, 0  ;;  %v2654_v29 = vperm.slane %v356_v19, 1  ;;  %v2656_v30 = vperm.slane %v357_v20, 1 }
   0xd   :  { %v2658_v31 = vperm.slane %v169_v22, 0  ;;  %v173_v32 = vperm.slane %v137_v27, 0  ;;  %v174_v33 = vperm.slane %v137_v27, 2  ;;  %v364_v34 = vperm.slane %v137_v27, 1  ;;  %v134_v36 = vld [vmem:[%s3746_s1 + $0x4] sm:$0xf] }
   0xe   :  { %v365_v35 = vperm.slane %v137_v27, 3  ;;  %vm484_vm2 = vcmask 1043458   ;;  %v2663_v37 = vperm.slane %v170_v23, 0  ;;  %v2665_v38 = vperm.slane %v360_v24, 1  ;;  %v1881_v45 = vld [vmem:[%s3748_s3 + $0xe0] sm:$0xf] }
   0xf   :  { %v2667_v39 = vperm.slane %v361_v25, 1  ;;  %v167_v40 = vperm.slane %v134_v36, 0  ;;  %v237_v41 = vperm.slane %v173_v32, 0  ;;  %v168_v42 = vperm.slane %v134_v36, 2  ;;  %v2311_v50 = vld [vmem:[%s3748_s3 + $0xec] sm:$0xf0] }
  0x10   :  { %v358_v43 = vperm.slane %v134_v36, 1  ;;  %v359_v44 = vperm.slane %v134_v36, 3  ;;  %v238_v46 = vperm.slane %v174_v33, 0  ;;  %v428_v47 = vperm.slane %v364_v34, 1  ;;  %v2009_v52 = vld [vmem:[%s3748_s3 + $0x1e0] sm:$0xf] }
  0x11   :  { %v429_v48 = vperm.slane %v365_v35, 1  ;;  %v2672_v49 = vperm.slane %v167_v40, 0  ;;  %v1882_v51 = vor.u32 %v2311_v50, %v1881_v45  ;;  %v2343_v53 = vld [vmem:[%s3748_s3 + $0x1ec] sm:$0xf0]  ;;  %v2309_v54 = vld [vmem:[%s3748_s3 + $0xe4] sm:$0xf] }
  0x12   :  { %80 = vrot.lane.b32.xlu0 %v2577_v6, %s2473_s17  ;;  %82 = vrot.lane.b32.xlu1 %v2582_v7, %s2473_s17  ;;  %v2010_v55 = vor.u32 %v2343_v53, %v2009_v52  ;;  %v1883_v56 = vld [vmem:[%s3748_s3 + $0xf0] sm:$0xf0]  ;;  %v2341_v57 = vld [vmem:[%s3748_s3 + $0x1e4] sm:$0xf]  ;;  %v2695_v60 = vperm.slane %v168_v42, 0  ;;  %v2697_v61 = vperm.slane %v358_v43, 1 }
  0x13   :  { %84 = vrot.lane.b32.xlu2 %v2591_v8, %s2473_s17  ;;  %v2011_v58 = vld [vmem:[%s3748_s3 + $0x1f0] sm:$0xf0]  ;;  %965 = vmatpush.bf16.msra.mxu0 %v1882_v51  ;;  %v1886_v62 = vor.u32 %v2309_v54, %v1883_v56  ;;  %v1865_v21 = vld [vmem:[%s3748_s3 + $0xc0] sm:$0xf]  ;;  %v2307_v22 = vld [vmem:[%s3748_s3 + $0xcc] sm:$0xf0] }
  0x14   :  { %v2014_v63 = vor.u32 %v2341_v57, %v2011_v58  ;;  %v138_v16 = vld [vmem:[%s3746_s1 + $0x14] sm:$0xf]  ;;  %978 = vmatpush.bf16.msra.mxu1 %v2010_v55  ;;  %v2339_v32 = vld [vmem:[%s3748_s3 + $0x1cc] sm:$0xf0]  ;;  %v2305_v33 = vld [vmem:[%s3748_s3 + $0xc4] sm:$0xf]  ;;  %v1866_v54 = vor.u32 %v2307_v22, %v1865_v21 }
  0x15   :  { %991 = vmatpush.bf16.msra.mxu2 %v1886_v62  ;;  %v2722_v34 = vperm.slane %v359_v44, 1  ;;  %v176_v50 = vperm.slane %v138_v16, 2  ;;  %v366_v51 = vperm.slane %v138_v16, 1  ;;  %v1995_v52 = vld [vmem:[%s3748_s3 + $0x1d0] sm:$0xf0]  ;;  %v367_v53 = vperm.slane %v138_v16, 3 }
  0x16   :  { %1004 = vmatpush.bf16.msra.mxu3 %v2014_v63  ;;  %v139_v57 = vld [vmem:[%s3746_s1 + $0x18] sm:$0xf]  ;;  %v1849_v58 = vld [vmem:[%s3748_s3 + $0xa0] sm:$0xf]  ;;  %vm1621_vm7 = vcmask 519168   ;;  %s1756_s27 = sshll.u32 %s2476_s26, 4  ;;  %s1757_s27 = int_to_ptr.vmem [resolvable:$true] %s1756_s27 }
  0x17   :  { %v240_v62 = vperm.slane %v176_v50, 0  ;;  %v430_v63 = vperm.slane %v366_v51, 1  ;;  %966 = vmatpush.bf16.msra.mxu0 %v1866_v54  ;;  %v368_v21 = vperm.slane %v139_v57, 1  ;;  %v1977_v22 = vld [vmem:[%s3748_s3 + $0x1a0] sm:$0xf] }
  0x18   :  { %v1979_v50 = vld [vmem:[%s3748_s3 + $0x1b0] sm:$0xf0] }
  0x1a   :  { %86 = vrot.lane.b32.xlu0 %v2598_v9, %s2473_s17  ;;  %88 = vrot.lane.b32.xlu1 %v2603_v10, %s2473_s17 }
  0x1b   :  { %90 = vrot.lane.b32.xlu2 %v2612_v11, %s2473_s17 }
  0x22   :  { %92 = vrot.lane.b32.xlu0 %v2619_v12, %s2473_s17  ;;  %94 = vrot.lane.b32.xlu1 %v2624_v13, %s2473_s17 }
  0x23   :  { %96 = vrot.lane.b32.xlu2 %v2633_v14, %s2473_s17 }
  0x2a   :  { %98 = vrot.lane.b32.xlu0 %v51_v15, %s2473_s17  ;;  %v136_v15 = vld [vmem:[%s3746_s1 + $0xc] sm:$0xf] }
  0x2b   :  { %v171_v18 = vperm.slane %v136_v15, 0  ;;  %v172_v19 = vperm.slane %v136_v15, 2  ;;  %v362_v20 = vperm.slane %v136_v15, 1  ;;  %v363_v40 = vperm.slane %v136_v15, 3 }
  0x2d   :  { %v2724_v35 = vperm.slane %v171_v18, 0  ;;  %v2726_v36 = vperm.slane %v172_v19, 0  ;;  %v2740_v44 = vperm.slane %v362_v20, 1  ;;  %v177_v19 = vperm.slane %v139_v57, 0 }
  0x2e   :  { %v178_v20 = vperm.slane %v139_v57, 2 }
  0x2f   :  { %v2782_v51 = vperm.slane %v177_v19, 0  ;;  %v2299_v19 = vld [vmem:[%s3748_s3 + $0x8c] sm:$0xf0] }
  0x5d   :  { %v77_v59 = vpop.permute.xlu2 %76 }
  0x5e   :  { %v121_v17 = vsel %vm116_vm0, %v2549_v2, %v77_v59  ;;  %v1993_v2 = vld [vmem:[%s3748_s3 + $0x1c0] sm:$0xf] }
  0x5f   :  { %v269_v23 = vmul.f32 %v237_v41, %v121_v17  ;;  %v270_v24 = vmul.f32 %v238_v46, %v121_v17  ;;  %v460_v25 = vmul.f32 %v428_v47, %v121_v17  ;;  %v461_v27 = vmul.f32 %v429_v48, %v121_v17  ;;  %v1867_v41 = vld [vmem:[%s3748_s3 + $0xd0] sm:$0xf0]  ;;  %v2337_v46 = vld [vmem:[%s3748_s3 + $0x1c4] sm:$0xf]  ;;  %v2303_v17 = vld [vmem:[%s3748_s3 + $0xac] sm:$0xf0] }
  0x60   :  { %v175_v48 = vperm.slane %v138_v16, 0  ;;  %v1994_v55 = vor.u32 %v2339_v32, %v1993_v2  ;;  %v1870_v56 = vor.u32 %v2305_v33, %v1867_v41  ;;  %v1998_v15 = vor.u32 %v2337_v46, %v1995_v52  ;;  %v2335_v2 = vld [vmem:[%s3748_s3 + $0x1ac] sm:$0xf0]  ;;  %v2301_v32 = vld [vmem:[%s3748_s3 + $0xa4] sm:$0xf] }
  0x61   :  { %v2732_v42 = vsel %vm293_vm1, %v269_v23, 0.0  ;;  %v2735_v43 = vsel %vm293_vm1, %v270_v24, 0.0  ;;  %v2738_v45 = vsel %vm484_vm2, %v460_v25, 0.0  ;;  %v2746_v47 = vsel %vm484_vm2, %v461_v27, 0.0 }
  0x62   :  { %v239_v59 = vperm.slane %v175_v48, 0  ;;  %v431_v16 = vperm.slane %v367_v53, 1  ;;  %979 = vmatpush.bf16.msra.mxu1 %v1994_v55  ;;  %v2763_v23 = vperm.slane %v363_v40, 1  ;;  %992 = vmatpush.bf16.msra.mxu2 %v1870_v56  ;;  %v369_v25 = vperm.slane %v139_v57, 3  ;;  %v2333_v48 = vld [vmem:[%s3748_s3 + $0x1a4] sm:$0xf] }
  0x63   :  { %1005 = vmatpush.bf16.msra.mxu3 %v1998_v15  ;;  %v1850_v27 = vor.u32 %v2303_v17, %v1849_v58  ;;  %v2784_v52 = vperm.slane %v178_v20, 0  ;;  %v2786_v53 = vperm.slane %v368_v21, 1  ;;  %v140_v55 = vld [vmem:[%s3746_s1 + $0x1c] sm:$0xf]  ;;  %v1982_v17 = vor.u32 %v2333_v48, %v1979_v50 }
  0x64   :  { %v2788_v54 = vperm.slane %v369_v25, 1  ;;  %v180_v20 = vperm.slane %v140_v55, 2  ;;  %v370_v21 = vperm.slane %v140_v55, 1 }
  0x65   :  { %v79_v18 = vpop.permute.xlu2 %78  ;;  %967 = vmatpush.bf16.msra.mxu0 %v1850_v27  ;;  %v1961_v27 = vld [vmem:[%s3748_s3 + $0x180] sm:$0xf] }
  0x66   :  { %v122_v24 = vsel %vm116_vm0, %v2570_v5, %v79_v18  ;;  %v1851_v5 = vld [vmem:[%s3748_s3 + $0xb0] sm:$0xf0]  ;;  %v1833_v18 = vld [vmem:[%s3748_s3 + $0x80] sm:$0xf] }
  0x67   :  { %v271_v33 = vmul.f32 %v239_v59, %v122_v24  ;;  %v272_v41 = vmul.f32 %v240_v62, %v122_v24  ;;  %v462_v46 = vmul.f32 %v430_v63, %v122_v24  ;;  %v463_v40 = vmul.f32 %v431_v16, %v122_v24  ;;  %v141_v62 = vld [vmem:[%s3746_s1 + $0x20] sm:$0xf]  ;;  %1006 = vmatpush.bf16.msra.mxu3 %v1982_v17  ;;  %v1835_v17 = vld [vmem:[%s3748_s3 + $0x90] sm:$0xf0] }
  0x68   :  { %v1978_v63 = vor.u32 %v2335_v2, %v1977_v22  ;;  %v1854_v15 = vor.u32 %v2301_v32, %v1851_v5  ;;  %v179_v16 = vperm.slane %v140_v55, 0  ;;  %v371_v24 = vperm.slane %v140_v55, 3  ;;  %v2297_v55 = vld [vmem:[%s3748_s3 + $0x84] sm:$0xf] }
  0x69   :  { %v2794_v56 = vsel %vm293_vm1, %v271_v33, 0.0  ;;  %v2797_v57 = vsel %vm293_vm1, %v272_v41, 0.0  ;;  %v2800_v58 = vsel %vm484_vm2, %v462_v46, 0.0  ;;  %v2803_v59 = vsel %vm484_vm2, %v463_v40, 0.0  ;;  %v2331_v41 = vld [vmem:[%s3748_s3 + $0x18c] sm:$0xf0] }
  0x6a   :  { %v181_v25 = vperm.slane %v141_v62, 0  ;;  %980 = vmatpush.bf16.msra.mxu1 %v1978_v63  ;;  %993 = vmatpush.bf16.msra.mxu2 %v1854_v15  ;;  %v2817_v22 = vperm.slane %v179_v16, 0  ;;  %v182_v2 = vperm.slane %v141_v62, 2  ;;  %v372_v32 = vperm.slane %v141_v62, 1 }
  0x6b   :  { %v373_v33 = vperm.slane %v141_v62, 3  ;;  %v2822_v46 = vperm.slane %v180_v20, 0  ;;  %v2824_v40 = vperm.slane %v370_v21, 1  ;;  %v2826_v5 = vperm.slane %v371_v24, 1 }
  0x6c   :  { %v245_v48 = vperm.slane %v181_v25, 0  ;;  %v246_v63 = vperm.slane %v182_v2, 0  ;;  %v436_v15 = vperm.slane %v372_v32, 1  ;;  %v1834_v21 = vor.u32 %v2299_v19, %v1833_v18  ;;  %v2329_v25 = vld [vmem:[%s3748_s3 + $0x184] sm:$0xf] }
  0x6d   :  { %v85_v50 = vpop.permute.xlu2 %84  ;;  %v437_v62 = vperm.slane %v373_v33, 1  ;;  %v1962_v24 = vor.u32 %v2331_v41, %v1961_v27  ;;  %v1838_v14 = vor.u32 %v2297_v55, %v1835_v17  ;;  %v1963_v2 = vld [vmem:[%s3748_s3 + $0x190] sm:$0xf0] }
  0x6e   :  { %v125_v16 = vsel %vm116_vm0, %v2591_v8, %v85_v50  ;;  %v142_v8 = vld [vmem:[%s3746_s1 + $0x24] sm:$0xf]  ;;  %v1966_v13 = vor.u32 %v2329_v25, %v1963_v2  ;;  %968 = vmatpush.bf16.msra.mxu0 %v1834_v21  ;;  %v1945_v2 = vld [vmem:[%s3748_s3 + $0x160] sm:$0xf] }
  0x6f   :  { %v277_v20 = vmul.f32 %v245_v48, %v125_v16  ;;  %v278_v32 = vmul.f32 %v246_v63, %v125_v16  ;;  %v468_v33 = vmul.f32 %v436_v15, %v125_v16  ;;  %v469_v50 = vmul.f32 %v437_v62, %v125_v16  ;;  %981 = vmatpush.bf16.msra.mxu1 %v1962_v24  ;;  %v1817_v24 = vld [vmem:[%s3748_s3 + $0x60] sm:$0xf] }
  0x70   :  { %v183_v19 = vperm.slane %v142_v8, 0  ;;  %v184_v27 = vperm.slane %v142_v8, 2  ;;  %v374_v41 = vperm.slane %v142_v8, 1  ;;  %994 = vmatpush.bf16.msra.mxu2 %v1838_v14  ;;  %1007 = vmatpush.bf16.msra.mxu3 %v1966_v13  ;;  %v375_v15 = vperm.slane %v142_v8, 3  ;;  %v2295_v14 = vld [vmem:[%s3748_s3 + $0x6c] sm:$0xf0] }
  0x71   :  { %v2846_v18 = vsel %vm293_vm1, %v277_v20, 0.0  ;;  %v2849_v17 = vsel %vm293_vm1, %v278_v32, 0.0  ;;  %v2852_v12 = vsel %vm484_vm2, %v468_v33, 0.0  ;;  %v2855_v63 = vsel %vm484_vm2, %v469_v50, 0.0  ;;  %v2327_v8 = vld [vmem:[%s3748_s3 + $0x16c] sm:$0xf0] }
  0x72   :  { %3764 = vst [vmem:[#allocation9_spill] sm:$0xff] %v2846_v18  ;;  %v2861_v20 = vperm.slane %v183_v19, 0  ;;  %v2863_v21 = vperm.slane %v184_v27, 0  ;;  %v2293_v32 = vld [vmem:[%s3748_s3 + $0x64] sm:$0xf]  ;;  %v1946_v11 = vor.u32 %v2327_v8, %v1945_v2 }
  0x73   :  { %3765 = vst [vmem:[#allocation10_spill] sm:$0xff] %v2849_v17  ;;  %v1819_v33 = vld [vmem:[%s3748_s3 + $0x70] sm:$0xf0]  ;;  %v2325_v50 = vld [vmem:[%s3748_s3 + $0x164] sm:$0xf] }
  0x74   :  { %v69_v48 = vpop.permute.xlu0 %68  ;;  %v73_v55 = vpop.permute.xlu1 %72  ;;  %3766 = vst [vmem:[#allocation11_spill] sm:$0xff] %v2852_v12  ;;  %v1947_v19 = vld [vmem:[%s3748_s3 + $0x170] sm:$0xf0]  ;;  %v143_v27 = vld [vmem:[%s3746_s1 + $0x28] sm:$0xf]  ;;  %982 = vmatpush.bf16.msra.mxu1 %v1946_v11 }
  0x75   :  { %3767 = vst [vmem:[#allocation12_spill] sm:$0xff] %v2855_v63  ;;  %v117_v62 = vsel %vm116_vm0, %v2535_v0, %v69_v48  ;;  %v119_v16 = vsel %vm116_vm0, %v2540_v1, %v73_v55  ;;  %v1822_v63 = vor.u32 %v2293_v32, %v1819_v33  ;;  %v1950_v12 = vor.u32 %v2325_v50, %v1947_v19 }
  0x76   :  { %3768 = vst [vmem:[#allocation13_spill] sm:$0xff] %v2861_v20  ;;  %v261_v13 = vmul.f32 %v2647_v26, %v117_v62  ;;  %v262_v25 = vmul.f32 %v2652_v28, %v117_v62  ;;  %v452_v0 = vmul.f32 %v2654_v29, %v117_v62  ;;  %v453_v1 = vmul.f32 %v2656_v30, %v117_v62 }
  0x77   :  { %3769 = vst [vmem:[#allocation14_spill] sm:$0xff] %v2863_v21  ;;  %v265_v26 = vmul.f32 %v2658_v31, %v119_v16  ;;  %v266_v28 = vmul.f32 %v2663_v37, %v119_v16  ;;  %v456_v29 = vmul.f32 %v2665_v38, %v119_v16  ;;  %v457_v30 = vmul.f32 %v2667_v39, %v119_v16 }
  0x78   :  { %v294_v31 = vsel %vm293_vm1, %v261_v13, 0.0  ;;  %v325_v37 = vsel %vm293_vm1, %v262_v25, 0.0  ;;  %v485_v38 = vsel %vm484_vm2, %v452_v0, 0.0  ;;  %v516_v39 = vsel %vm484_vm2, %v453_v1, 0.0  ;;  %v2911_v13 = vld [vmem:[%s3746_s1 + $0x2c] sm:$0xf]  ;;  %995 = vmatpush.bf16.msra.mxu2 %v1822_v63  ;;  %1008 = vmatpush.bf16.msra.mxu3 %v1950_v12 }
  0x79   :  { %v297_v48 = vsel %vm293_vm1, %v265_v26, 0.0  ;;  %v328_v55 = vsel %vm293_vm1, %v266_v28, 0.0  ;;  %v488_v62 = vsel %vm484_vm2, %v456_v29, 0.0  ;;  %v519_v16 = vsel %vm484_vm2, %v457_v30, 0.0 }
  0x7a   :  { %v2913_v25 = vperm.slane %v374_v41, 1  ;;  %v2915_v0 = vperm.slane %v375_v15, 1  ;;  %v1818_v1 = vor.u32 %v2295_v14, %v1817_v24  ;;  %v185_v26 = vperm.slane %v143_v27, 0 }
  0x7b   :  { %v186_v17 = vperm.slane %v143_v27, 2  ;;  %v376_v29 = vperm.slane %v143_v27, 1  ;;  %v377_v30 = vperm.slane %v143_v27, 3  ;;  %v187_v21 = vperm.slane %v2911_v13, 0 }
  0x7c   :  { %v71_v28 = vpop.permute.xlu0 %70  ;;  %v75_v18 = vpop.permute.xlu1 %74  ;;  %969 = vmatpush.bf16.msra.mxu0 %v1818_v1  ;;  %v188_v20 = vperm.slane %v2911_v13, 2  ;;  %v2923_v24 = vperm.slane %v185_v26, 0 }
  0x7d   :  { %v118_v41 = vsel %vm116_vm0, %v2556_v3, %v71_v28  ;;  %v120_v15 = vsel %vm116_vm0, %v2561_v4, %v75_v18  ;;  %v2925_v14 = vperm.slane %v186_v17, 0 }
  0x7e   :  { %v263_v11 = vmul.f32 %v2672_v49, %v118_v41  ;;  %v264_v2 = vmul.f32 %v2695_v60, %v118_v41  ;;  %v454_v8 = vmul.f32 %v2697_v61, %v118_v41  ;;  %v455_v32 = vmul.f32 %v2722_v34, %v118_v41 }
  0x7f   :  { %v267_v33 = vmul.f32 %v2724_v35, %v120_v15  ;;  %v268_v3 = vmul.f32 %v2726_v36, %v120_v15  ;;  %v458_v4 = vmul.f32 %v2740_v44, %v120_v15  ;;  %v459_v12 = vmul.f32 %v2763_v23, %v120_v15 }
  0x80   :  { %v295_v18 = vsel %vm293_vm1, %v263_v11, 0.0  ;;  %v326_v17 = vsel %vm293_vm1, %v264_v2, 0.0  ;;  %v486_v49 = vsel %vm484_vm2, %v454_v8, 0.0  ;;  %v517_v60 = vsel %vm484_vm2, %v455_v32, 0.0 }
  0x81   :  { %v296_v63 = vadd.f32 %v295_v18, %v294_v31  ;;  %v327_v61 = vadd.f32 %v326_v17, %v325_v37  ;;  %v487_v50 = vadd.f32 %v486_v49, %v485_v38  ;;  %v518_v34 = vadd.f32 %v517_v60, %v516_v39 }
  0x82   :  { %v299_v35 = vsel %vm293_vm1, %v267_v33, 0.0  ;;  %v330_v36 = vsel %vm293_vm1, %v268_v3, 0.0  ;;  %v490_v44 = vsel %vm484_vm2, %v458_v4, 0.0  ;;  %v521_v23 = vsel %vm484_vm2, %v459_v12, 0.0 }
  0x83   :  { %v298_v19 = vadd.f32 %v297_v48, %v296_v63  ;;  %v329_v27 = vadd.f32 %v328_v55, %v327_v61  ;;  %v489_v1 = vadd.f32 %v488_v62, %v487_v50  ;;  %v520_v26 = vadd.f32 %v519_v16, %v518_v34 }
  0x84   :  { %v81_v28 = vpop.permute.xlu0 %80  ;;  %v83_v41 = vpop.permute.xlu1 %82  ;;  %v2943_v15 = vperm.slane %v376_v29, 1  ;;  %v2945_v31 = vperm.slane %v377_v30, 1  ;;  %v2947_v37 = vperm.slane %v187_v21, 0  ;;  %v2949_v38 = vperm.slane %v188_v20, 0 }
  0x85   :  { %v300_v39 = vadd.f32 %v299_v35, %v298_v19  ;;  %v331_v11 = vadd.f32 %v330_v36, %v329_v27  ;;  %v491_v2 = vadd.f32 %v490_v44, %v489_v1  ;;  %v522_v8 = vadd.f32 %v521_v23, %v520_v26  ;;  %v3770_v44 = vld [vmem:[#allocation13_spill] sm:$0xff]  ;;  %v2291_v26 = vld [vmem:[%s3748_s3 + $0x4c] sm:$0xf0] }
  0x86   :  { %v123_v48 = vsel %vm116_vm0, %v2577_v6, %v81_v28  ;;  %v124_v55 = vsel %vm116_vm0, %v2582_v7, %v83_v41  ;;  %v378_v62 = vperm.slane %v2911_v13, 1  ;;  %v379_v16 = vperm.slane %v2911_v13, 3  ;;  %v1801_v1 = vld [vmem:[%s3748_s3 + $0x40] sm:$0xf] }
  0x87   :  { %v302_v29 = vadd.f32 %v2732_v42, %v300_v39  ;;  %v333_v21 = vadd.f32 %v2735_v43, %v331_v11  ;;  %v493_v20 = vadd.f32 %v2738_v45, %v491_v2  ;;  %v524_v30 = vadd.f32 %v2746_v47, %v522_v8  ;;  %v3772_v28 = vld [vmem:[#allocation9_spill] sm:$0xff]  ;;  %v3773_v39 = vld [vmem:[#allocation10_spill] sm:$0xff]  ;;  %v3774_v2 = vld [vmem:[#allocation11_spill] sm:$0xff] }
  0x88   :  { %v273_v32 = vmul.f32 %v2782_v51, %v123_v48  ;;  %v274_v33 = vmul.f32 %v2784_v52, %v123_v48  ;;  %v464_v6 = vmul.f32 %v2786_v53, %v123_v48  ;;  %v465_v7 = vmul.f32 %v2788_v54, %v123_v48  ;;  %v3775_v48 = vld [vmem:[#allocation12_spill] sm:$0xff] }
  0x89   :  { %v304_v3 = vadd.f32 %v2794_v56, %v302_v29  ;;  %v335_v13 = vadd.f32 %v2797_v57, %v333_v21  ;;  %v495_v42 = vadd.f32 %v2800_v58, %v493_v20  ;;  %v526_v43 = vadd.f32 %v2803_v59, %v524_v30  ;;  %v91_v30 = vpop.permute.xlu2 %90 }
  0x8a   :  { %v305_v45 = vsel %vm293_vm1, %v273_v32, 0.0  ;;  %v336_v47 = vsel %vm293_vm1, %v274_v33, 0.0  ;;  %v496_v51 = vsel %vm484_vm2, %v464_v6, 0.0  ;;  %v527_v52 = vsel %vm484_vm2, %v465_v7, 0.0  ;;  %v1803_v32 = vld [vmem:[%s3748_s3 + $0x50] sm:$0xf0] }
  0x8b   :  { %v306_v4 = vadd.f32 %v305_v45, %v304_v3  ;;  %v337_v53 = vadd.f32 %v336_v47, %v335_v13  ;;  %v497_v12 = vadd.f32 %v496_v51, %v495_v42  ;;  %v528_v54 = vadd.f32 %v527_v52, %v526_v43  ;;  %v3776_v47 = vld [vmem:[#allocation5_spill] sm:$0xff] }
  0x8c   :  { %v275_v56 = vmul.f32 %v2817_v22, %v124_v55  ;;  %v276_v57 = vmul.f32 %v2822_v46, %v124_v55  ;;  %v466_v58 = vmul.f32 %v2824_v40, %v124_v55  ;;  %v467_v59 = vmul.f32 %v2826_v5, %v124_v55  ;;  %v87_v18 = vpop.permute.xlu0 %86  ;;  %v89_v17 = vpop.permute.xlu1 %88 }
  0x8d   :  { %v126_v49 = vsel %vm116_vm0, %v2598_v9, %v87_v18  ;;  %v127_v60 = vsel %vm116_vm0, %v2603_v10, %v89_v17  ;;  %v442_v63 = vperm.slane %v378_v62, 1  ;;  %v443_v61 = vperm.slane %v379_v16, 1  ;;  %v3771_v9 = vld [vmem:[#allocation14_spill] sm:$0xff]  ;;  %v2289_v62 = vld [vmem:[%s3748_s3 + $0x44] sm:$0xf] }
  0x8e   :  { %v307_v50 = vsel %vm293_vm1, %v275_v56, 0.0  ;;  %v338_v22 = vsel %vm293_vm1, %v276_v57, 0.0  ;;  %v498_v46 = vsel %vm484_vm2, %v466_v58, 0.0  ;;  %v529_v40 = vsel %vm484_vm2, %v467_v59, 0.0  ;;  %v145_v56 = vld [vmem:[%s3746_s1 + $0x30] sm:$0xf] }
  0x8f   :  { %v308_v34 = vadd.f32 %v307_v50, %v306_v4  ;;  %v339_v5 = vadd.f32 %v338_v22, %v337_v53  ;;  %v499_v35 = vadd.f32 %v498_v46, %v497_v12  ;;  %v530_v36 = vadd.f32 %v529_v40, %v528_v54  ;;  %v2321_v12 = vld [vmem:[%s3748_s3 + $0x144] sm:$0xf]  ;;  %v1785_v22 = vld [vmem:[%s3748_s3 + $0x20] sm:$0xf]  ;;  %v2287_v46 = vld [vmem:[%s3748_s3 + $0x2c] sm:$0xf0] }
  0x90   :  { %v279_v23 = vmul.f32 %v3770_v44, %v126_v49  ;;  %v280_v19 = vmul.f32 %v3771_v9, %v126_v49  ;;  %v470_v10 = vmul.f32 %v2913_v25, %v126_v49  ;;  %v471_v27 = vmul.f32 %v2915_v0, %v126_v49  ;;  %v1929_v25 = vld [vmem:[%s3748_s3 + $0x140] sm:$0xf]  ;;  %v2323_v0 = vld [vmem:[%s3748_s3 + $0x14c] sm:$0xf0] }
  0x91   :  { %v310_v41 = vadd.f32 %v3772_v28, %v308_v34  ;;  %v341_v11 = vadd.f32 %v3773_v39, %v339_v5  ;;  %v501_v8 = vadd.f32 %v3774_v2, %v499_v35  ;;  %v532_v55 = vadd.f32 %v3775_v48, %v530_v36  ;;  %v1913_v40 = vld [vmem:[%s3748_s3 + $0x120] sm:$0xf]  ;;  %v2285_v5 = vld [vmem:[%s3748_s3 + $0x24] sm:$0xf]  ;;  %v146_v48 = vld [vmem:[%s3746_s1 + $0x34] sm:$0xf] }
  0x92   :  { %v311_v16 = vsel %vm293_vm1, %v279_v23, 0.0  ;;  %v342_v29 = vsel %vm293_vm1, %v280_v19, 0.0  ;;  %v502_v21 = vsel %vm484_vm2, %v470_v10, 0.0  ;;  %v533_v20 = vsel %vm484_vm2, %v471_v27, 0.0  ;;  %v1787_v19 = vld [vmem:[%s3748_s3 + $0x30] sm:$0xf0] }
  0x93   :  { %v312_v33 = vadd.f32 %v311_v16, %v310_v41  ;;  %v343_v6 = vadd.f32 %v342_v29, %v341_v11  ;;  %v503_v7 = vadd.f32 %v502_v21, %v501_v8  ;;  %v534_v3 = vadd.f32 %v533_v20, %v532_v55  ;;  %v2317_v28 = vld [vmem:[%s3748_s3 + $0x124] sm:$0xf]  ;;  %v1915_v41 = vld [vmem:[%s3748_s3 + $0x130] sm:$0xf0]  ;;  %v3777_v55 = vld [vmem:[#allocation6_spill] sm:$0xff] }
  0x94   :  { %v281_v13 = vmul.f32 %v2923_v24, %v127_v60  ;;  %v282_v42 = vmul.f32 %v2925_v14, %v127_v60  ;;  %v472_v43 = vmul.f32 %v2943_v15, %v127_v60  ;;  %v473_v45 = vmul.f32 %v2945_v31, %v127_v60  ;;  %v1931_v24 = vld [vmem:[%s3748_s3 + $0x150] sm:$0xf0]  ;;  %v93_v9 = vpop.permute.xlu0 %92 }
  0x95   :  { %v128_v51 = vsel %vm116_vm0, %v3776_v47, %v91_v30  ;;  %v1802_v52 = vor.u32 %v2291_v26, %v1801_v1  ;;  %v1930_v4 = vor.u32 %v2323_v0, %v1929_v25  ;;  %v1806_v53 = vor.u32 %v2289_v62, %v1803_v32  ;;  %v147_v47 = vld [vmem:[%s3746_s1 + $0x38] sm:$0xf] }
  0x96   :  { %v313_v14 = vsel %vm293_vm1, %v281_v13, 0.0  ;;  %v344_v15 = vsel %vm293_vm1, %v282_v42, 0.0  ;;  %v504_v31 = vsel %vm484_vm2, %v472_v43, 0.0  ;;  %v535_v54 = vsel %vm484_vm2, %v473_v45, 0.0  ;;  %v95_v45 = vpop.permute.xlu1 %94 }
  0x97   :  { %v314_v57 = vadd.f32 %v313_v14, %v312_v33  ;;  %v345_v58 = vadd.f32 %v344_v15, %v343_v6  ;;  %v505_v59 = vadd.f32 %v504_v31, %v503_v7  ;;  %v536_v18 = vadd.f32 %v535_v54, %v534_v3  ;;  %970 = vmatpush.bf16.msra.mxu0 %v1802_v52  ;;  %v3778_v54 = vld [vmem:[#allocation7_spill] sm:$0xff] }
  0x98   :  { %v283_v17 = vmul.f32 %v2947_v37, %v128_v51  ;;  %v284_v49 = vmul.f32 %v2949_v38, %v128_v51  ;;  %v474_v60 = vmul.f32 %v442_v63, %v128_v51  ;;  %v475_v50 = vmul.f32 %v443_v61, %v128_v51  ;;  %983 = vmatpush.bf16.msra.mxu1 %v1930_v4  ;;  %v2319_v37 = vld [vmem:[%s3748_s3 + $0x12c] sm:$0xf0] }
  0x99   :  { %996 = vmatpush.bf16.msra.mxu2 %v1806_v53  ;;  %v1934_v38 = vor.u32 %v2321_v12, %v1931_v24  ;;  %v189_v63 = vperm.slane %v145_v56, 0  ;;  %v190_v61 = vperm.slane %v145_v56, 2  ;;  %v380_v34 = vperm.slane %v145_v56, 1 }
  0x9a   :  { %v315_v35 = vsel %vm293_vm1, %v283_v17, 0.0  ;;  %v346_v36 = vsel %vm293_vm1, %v284_v49, 0.0  ;;  %v506_v44 = vsel %vm484_vm2, %v474_v60, 0.0  ;;  %v537_v23 = vsel %vm484_vm2, %v475_v50, 0.0  ;;  %v1769_v60 = vld [vmem:[%s3748_s3] sm:$0xf] }
  0x9b   :  { %v316_v10 = vadd.f32 %v315_v35, %v314_v57  ;;  %v347_v27 = vadd.f32 %v346_v36, %v345_v58  ;;  %v507_v1 = vadd.f32 %v506_v44, %v505_v59  ;;  %v538_v26 = vadd.f32 %v537_v23, %v536_v18  ;;  %1009 = vmatpush.bf16.msra.mxu3 %v1934_v38  ;;  %v2283_v50 = vld [vmem:[%s3748_s3 + $0xc] sm:$0xf0]  ;;  %v97_v38 = vpop.permute.xlu2 %96  ;;  %v1771_v23 = vld [vmem:[%s3748_s3 + $0x10] sm:$0xf0] }
  0x9c   :  { %v253_v39 = vperm.slane %v189_v63, 0  ;;  %v254_v11 = vperm.slane %v190_v61, 0  ;;  %v381_v2 = vperm.slane %v145_v56, 3  ;;  %v444_v8 = vperm.slane %v380_v34, 1  ;;  %v1897_v63 = vld [vmem:[%s3748_s3 + $0x100] sm:$0xf] }
  0x9d   :  { %v129_v25 = vsel %vm116_vm0, %v3777_v55, %v93_v9  ;;  %v1786_v0 = vor.u32 %v2287_v46, %v1785_v22  ;;  %v1914_v62 = vor.u32 %v2319_v37, %v1913_v40  ;;  %v1790_v16 = vor.u32 %v2285_v5, %v1787_v19  ;;  %v2315_v61 = vld [vmem:[%s3748_s3 + $0x10c] sm:$0xf0]  ;;  %v2281_v34 = vld [vmem:[%s3748_s3 + $0x4] sm:$0xf] }
  0x9e   :  { %v445_v29 = vperm.slane %v381_v2, 1  ;;  %v285_v21 = vmul.f32 %v253_v39, %v129_v25  ;;  %v286_v20 = vmul.f32 %v254_v11, %v129_v25  ;;  %v476_v30 = vmul.f32 %v444_v8, %v129_v25  ;;  %v3779_v39 = vld [vmem:[#allocation8_spill] sm:$0xff]  ;;  %v1889_v8 = vld [vmem:[%s3748_s3 + $0xe8] sm:$0xf] }
  0x9f   :  { %971 = vmatpush.bf16.msra.mxu0 %v1786_v0  ;;  %984 = vmatpush.bf16.msra.mxu1 %v1914_v62  ;;  %v1918_v32 = vor.u32 %v2317_v28, %v1915_v41  ;;  %v191_v33 = vperm.slane %v146_v48, 0  ;;  %v192_v6 = vperm.slane %v146_v48, 2  ;;  %v382_v7 = vperm.slane %v146_v48, 1 }
  0xa0   :  { %v317_v3 = vsel %vm293_vm1, %v285_v21, 0.0  ;;  %v348_v13 = vsel %vm293_vm1, %v286_v20, 0.0  ;;  %v477_v42 = vmul.f32 %v445_v29, %v129_v25  ;;  %v508_v43 = vsel %vm484_vm2, %v476_v30, 0.0  ;;  %997 = vmatpush.bf16.msra.mxu2 %v1790_v16  ;;  %v2017_v16 = vld [vmem:[%s3748_s3 + $0x1e8] sm:$0xf] }
  0xa1   :  { %v318_v51 = vadd.f32 %v317_v3, %v316_v10  ;;  %v349_v52 = vadd.f32 %v348_v13, %v347_v27  ;;  %v509_v4 = vadd.f32 %v508_v43, %v507_v1  ;;  %1010 = vmatpush.bf16.msra.mxu3 %v1918_v32  ;;  %v255_v53 = vperm.slane %v191_v33, 0  ;;  %v2313_v1 = vld [vmem:[%s3748_s3 + $0x104] sm:$0xf]  ;;  %v2344_v29 = vld [vmem:[%s3748_s3 + $0x1f4] sm:$0xf0] }
  0xa2   :  { %v539_v12 = vsel %vm484_vm2, %v477_v42, 0.0  ;;  %v256_v24 = vperm.slane %v192_v6, 0  ;;  %v383_v14 = vperm.slane %v146_v48, 3  ;;  %v446_v15 = vperm.slane %v382_v7, 1  ;;  %v2312_v48 = vld [vmem:[%s3748_s3 + $0xf4] sm:$0xf0] }
  0xa3   :  { %v540_v31 = vadd.f32 %v539_v12, %v538_v26  ;;  %v130_v56 = vsel %vm116_vm0, %v3778_v54, %v95_v45  ;;  %v193_v57 = vperm.slane %v147_v47, 0  ;;  %v194_v58 = vperm.slane %v147_v47, 2  ;;  %v1899_v26 = vld [vmem:[%s3748_s3 + $0x110] sm:$0xf0]  ;;  %v2310_v21 = vld [vmem:[%s3748_s3 + $0xec] sm:$0xf] }
  0xa4   :  { %v447_v59 = vperm.slane %v383_v14, 1  ;;  %v287_v18 = vmul.f32 %v255_v53, %v130_v56  ;;  %v288_v17 = vmul.f32 %v256_v24, %v130_v56  ;;  %v478_v49 = vmul.f32 %v446_v15, %v130_v56  ;;  %v1891_v6 = vld [vmem:[%s3748_s3 + $0xf8] sm:$0xf0]  ;;  %v2342_v7 = vld [vmem:[%s3748_s3 + $0x1ec] sm:$0xf] }
  0xa5   :  { %v257_v22 = vperm.slane %v193_v57, 0  ;;  %v258_v46 = vperm.slane %v194_v58, 0  ;;  %v384_v40 = vperm.slane %v147_v47, 1  ;;  %v385_v37 = vperm.slane %v147_v47, 3  ;;  %v148_v3 = vld [vmem:[%s3746_s1 + $0x3c] sm:$0xf] }
  0xa6   :  { %v319_v5 = vsel %vm293_vm1, %v287_v18, 0.0  ;;  %v350_v35 = vsel %vm293_vm1, %v288_v17, 0.0  ;;  %v479_v36 = vmul.f32 %v447_v59, %v130_v56  ;;  %v510_v44 = vsel %vm484_vm2, %v478_v49, 0.0  ;;  %v2019_v47 = vld [vmem:[%s3748_s3 + $0x1f8] sm:$0xf0]  ;;  %v99_v59 = vpop.permute.xlu0 %98 }
  0xa7   :  { %v320_v9 = vadd.f32 %v319_v5, %v318_v51  ;;  %v351_v19 = vadd.f32 %v350_v35, %v349_v52  ;;  %v511_v10 = vadd.f32 %v510_v44, %v509_v4  ;;  %v448_v27 = vperm.slane %v384_v40, 1  ;;  %v547_v12 = vld [vmem:[%s3747_s2] sm:$0xf]  ;;  %v1873_v18 = vld [vmem:[%s3748_s3 + $0xc8] sm:$0xf] }
  0xa8   :  { %v541_v28 = vsel %vm484_vm2, %v479_v36, 0.0  ;;  %v449_v41 = vperm.slane %v385_v37, 1  ;;  %v131_v11 = vsel %vm116_vm0, %v3779_v39, %v97_v38  ;;  %v1770_v2 = vor.u32 %v2283_v50, %v1769_v60  ;;  %v2308_v17 = vld [vmem:[%s3748_s3 + $0xd4] sm:$0xf0]  ;;  %v2001_v49 = vld [vmem:[%s3748_s3 + $0x1c8] sm:$0xf] }
  0xa9   :  { %v542_v55 = vadd.f32 %v541_v28, %v540_v31  ;;  %v289_v25 = vmul.f32 %v257_v22, %v131_v11  ;;  %v290_v0 = vmul.f32 %v258_v46, %v131_v11  ;;  %v480_v62 = vmul.f32 %v448_v27, %v131_v11  ;;  %v2340_v60 = vld [vmem:[%s3748_s3 + $0x1d4] sm:$0xf0]  ;;  %v2306_v50 = vld [vmem:[%s3748_s3 + $0xcc] sm:$0xf]  ;;  %v1875_v22 = vld [vmem:[%s3748_s3 + $0xd8] sm:$0xf0] }
  0xaa   :  { %v481_v20 = vmul.f32 %v449_v41, %v131_v11  ;;  %972 = vmatpush.bf16.msra.mxu0 %v1770_v2  ;;  %v1898_v30 = vor.u32 %v2315_v61, %v1897_v63  ;;  %v1774_v32 = vor.u32 %v2281_v34, %v1771_v23  ;;  %v1902_v33 = vor.u32 %v2313_v1, %v1899_v26  ;;  %v2338_v63 = vld [vmem:[%s3748_s3 + $0x1cc] sm:$0xf]  ;;  %v2003_v36 = vld [vmem:[%s3748_s3 + $0x1d8] sm:$0xf0]  ;;  %v1857_v27 = vld [vmem:[%s3748_s3 + $0xa8] sm:$0xf] }
  0xab   :  { %v321_v13 = vsel %vm293_vm1, %v289_v25, 0.0  ;;  %v352_v42 = vsel %vm293_vm1, %v290_v0, 0.0  ;;  %v512_v43 = vsel %vm484_vm2, %v480_v62, 0.0  ;;  %v1890_v45 = vor.u32 %v2312_v48, %v1889_v8  ;;  %v2304_v1 = vld [vmem:[%s3748_s3 + $0xb4] sm:$0xf0] }
  0xac   :  { %v322_v51 = vadd.f32 %v321_v13, %v320_v9  ;;  %v353_v52 = vadd.f32 %v352_v42, %v351_v19  ;;  %v513_v4 = vadd.f32 %v512_v43, %v511_v10  ;;  %v543_v53 = vsel %vm484_vm2, %v481_v20, 0.0  ;;  %985 = vmatpush.bf16.msra.mxu1 %v1898_v30  ;;  %998 = vmatpush.bf16.msra.mxu2 %v1774_v32  ;;  %v2446_v19 = vld [vmem:[%s3745_s0 + $0x3c] sm:$0xf]  ;;  %v1985_v11 = vld [vmem:[%s3748_s3 + $0x1a8] sm:$0xf] }
  0xad   :  { %v3142_v24 = vadd.f32 %v543_v53, %v542_v55  ;;  %1011 = vmatpush.bf16.msra.mxu3 %v1902_v33  ;;  %v2018_v14 = vor.u32 %v2344_v29, %v2017_v16  ;;  %v1894_v15 = vor.u32 %v2310_v21, %v1891_v6  ;;  %v195_v31 = vperm.slane %v148_v3, 0  ;;  %v2336_v2 = vld [vmem:[%s3748_s3 + $0x1b4] sm:$0xf0]  ;;  %v2302_v0 = vld [vmem:[%s3748_s3 + $0xac] sm:$0xf] }
  0xae   :  { %1017 = vmatpush.bf16.msrb.mxu0 %v1890_v45  ;;  %v2022_v54 = vor.u32 %v2342_v7, %v2019_v47  ;;  %v196_v56 = vperm.slane %v148_v3, 2  ;;  %v386_v57 = vperm.slane %v148_v3, 1  ;;  %v387_v58 = vperm.slane %v148_v3, 3  ;;  %v1859_v62 = vld [vmem:[%s3748_s3 + $0xb8] sm:$0xf0] }
  0xaf   :  { %v259_v46 = vperm.slane %v195_v31, 0  ;;  %v549_v40 = vperm.slane %v547_v12, 0  ;;  %v550_v37 = vperm.slane %v547_v12, 2  ;;  %v557_v38 = vperm.slane %v547_v12, 1  ;;  %v2334_v16 = vld [vmem:[%s3748_s3 + $0x1ac] sm:$0xf] }
  0xb0   :  { %1030 = vmatpush.bf16.msrb.mxu1 %v2018_v14  ;;  %1043 = vmatpush.bf16.msrb.mxu2 %v1894_v15  ;;  %v260_v61 = vperm.slane %v196_v56, 0  ;;  %v450_v34 = vperm.slane %v386_v57, 1  ;;  %v451_v5 = vperm.slane %v387_v58, 1  ;;  %v558_v35 = vperm.slane %v547_v12, 3  ;;  %v1987_v32 = vld [vmem:[%s3748_s3 + $0x1b8] sm:$0xf0] }
  0xb1   :  { %1056 = vmatpush.bf16.msrb.mxu3 %v2022_v54  ;;  %v553_v44 = vperm.slane %v549_v40, 0  ;;  %v554_v23 = vperm.slane %v550_v37, 0  ;;  %v561_v9 = vperm.slane %v557_v38, 1  ;;  %v132_v10 = vsel %vm116_vm0, %v2446_v19, %v99_v59  ;;  %v1841_v13 = vld [vmem:[%s3748_s3 + $0x88] sm:$0xf] }
  0xb2   :  { %v562_v26 = vperm.slane %v558_v35, 1  ;;  %v291_v28 = vmul.f32 %v259_v46, %v132_v10  ;;  %v292_v41 = vmul.f32 %v260_v61, %v132_v10  ;;  %v482_v39 = vmul.f32 %v450_v34, %v132_v10  ;;  %v2300_v42 = vld [vmem:[%s3748_s3 + $0x94] sm:$0xf0]  ;;  %v1843_v15 = vld [vmem:[%s3748_s3 + $0x98] sm:$0xf0] }
  0xb3   :  { %v483_v8 = vmul.f32 %v451_v5, %v132_v10  ;;  %v1874_v48 = vor.u32 %v2308_v17, %v1873_v18  ;;  %v2002_v55 = vor.u32 %v2340_v60, %v2001_v49  ;;  %v1878_v25 = vor.u32 %v2306_v50, %v1875_v22  ;;  %v2330_v31 = vld [vmem:[%s3748_s3 + $0x18c] sm:$0xf]  ;;  %v1971_v54 = vld [vmem:[%s3748_s3 + $0x198] sm:$0xf0]  ;;  %v1825_v58 = vld [vmem:[%s3748_s3 + $0x68] sm:$0xf] }
  0xb4   :  { %v323_v29 = vsel %vm293_vm1, %v291_v28, 0.0  ;;  %v354_v21 = vsel %vm293_vm1, %v292_v41, 0.0  ;;  %v514_v20 = vsel %vm484_vm2, %v482_v39, 0.0  ;;  %v2006_v30 = vor.u32 %v2338_v63, %v2003_v36  ;;  %v2296_v49 = vld [vmem:[%s3748_s3 + $0x74] sm:$0xf0] }
  0xb5   :  { %v324_v33 = vadd.f32 %v323_v29, %v322_v51  ;;  %v355_v6 = vadd.f32 %v354_v21, %v353_v52  ;;  %v515_v7 = vadd.f32 %v514_v20, %v513_v4  ;;  %v545_v3 = vsel %vm484_vm2, %v483_v8, 0.0  ;;  %1018 = vmatpush.bf16.msrb.mxu0 %v1874_v48  ;;  %1031 = vmatpush.bf16.msrb.mxu1 %v2002_v55  ;;  %v1969_v51 = vld [vmem:[%s3748_s3 + $0x188] sm:$0xf]  ;;  %v2332_v52 = vld [vmem:[%s3748_s3 + $0x194] sm:$0xf0] }
  0xb6   :  { %v546_v43 = vadd.f32 %v545_v3, %v3142_v24  ;;  %1044 = vmatpush.bf16.msrb.mxu2 %v1878_v25  ;;  %1057 = vmatpush.bf16.msrb.mxu3 %v2006_v30  ;;  %v1858_v45 = vor.u32 %v2304_v1, %v1857_v27  ;;  %v1986_v47 = vor.u32 %v2336_v2, %v1985_v11  ;;  %v2298_v4 = vld [vmem:[%s3748_s3 + $0x8c] sm:$0xf]  ;;  %v1953_v60 = vld [vmem:[%s3748_s3 + $0x168] sm:$0xf]  ;;  %v2328_v50 = vld [vmem:[%s3748_s3 + $0x174] sm:$0xf0] }
  0xb7   :  { %v555_v53 = vadd.f32 %v553_v44, %v324_v33  ;;  %v556_v12 = vadd.f32 %v554_v23, %v355_v6  ;;  %v563_v14 = vadd.f32 %v561_v9, %v515_v7  ;;  %v1862_v24 = vor.u32 %v2302_v0, %v1859_v62  ;;  %v2294_v38 = vld [vmem:[%s3748_s3 + $0x6c] sm:$0xf]  ;;  %v1827_v63 = vld [vmem:[%s3748_s3 + $0x78] sm:$0xf0]  ;;  %v1809_v9 = vld [vmem:[%s3748_s3 + $0x48] sm:$0xf] }
  0xb8   :  { %v564_v56 = vadd.f32 %v562_v26, %v546_v43  ;;  %v1990_v57 = vor.u32 %v2334_v16, %v1987_v32  ;;  %v1842_v18 = vor.u32 %v2300_v42, %v1841_v13  ;;  %v1970_v17 = vor.u32 %v2332_v52, %v1969_v51  ;;  %v2326_v34 = vld [vmem:[%s3748_s3 + $0x16c] sm:$0xf]  ;;  %v1955_v5 = vld [vmem:[%s3748_s3 + $0x178] sm:$0xf0]  ;;  %v2292_v19 = vld [vmem:[%s3748_s3 + $0x54] sm:$0xf0] }
  0xb9   :  { %v565_v59 = vsel %vm293_vm1, %v555_v53, %v563_v14  ;;  %1019 = vmatpush.bf16.msrb.mxu0 %v1858_v45  ;;  %1032 = vmatpush.bf16.msrb.mxu1 %v1986_v47  ;;  %v1846_v40 = vor.u32 %v2298_v4, %v1843_v15  ;;  %v1974_v37 = vor.u32 %v2330_v31, %v1971_v54  ;;  %v1937_v1 = vld [vmem:[%s3748_s3 + $0x148] sm:$0xf]  ;;  %v2324_v26 = vld [vmem:[%s3748_s3 + $0x154] sm:$0xf0]  ;;  %v2290_v28 = vld [vmem:[%s3748_s3 + $0x4c] sm:$0xf] }
  0xba   :  { %v566_v22 = vsel %vm293_vm1, %v556_v12, %v564_v56  ;;  %v567_v46 = vmax.f32 %v565_v59, 0.0  ;;  %1045 = vmatpush.bf16.msrb.mxu2 %v1862_v24  ;;  %1058 = vmatpush.bf16.msrb.mxu3 %v1990_v57  ;;  %v1826_v44 = vor.u32 %v2296_v49, %v1825_v58  ;;  %v1954_v23 = vor.u32 %v2328_v50, %v1953_v60  ;;  %v1811_v41 = vld [vmem:[%s3748_s3 + $0x58] sm:$0xf0]  ;;  %v2322_v39 = vld [vmem:[%s3748_s3 + $0x14c] sm:$0xf] }
  0xbb   :  { %v568_v61 = vmax.f32 %v566_v22, 0.0  ;;  %v1830_v10 = vor.u32 %v2294_v38, %v1827_v63  ;;  %v1958_v27 = vor.u32 %v2326_v34, %v1955_v5  ;;  %v1939_v11 = vld [vmem:[%s3748_s3 + $0x158] sm:$0xf0]  ;;  %v1810_v2 = vor.u32 %v2292_v19, %v1809_v9  ;;  %v1793_v48 = vld [vmem:[%s3748_s3 + $0x28] sm:$0xf] }
  0xbc   :  { %v3251_v35 = vpack.c.bf16 %v567_v46, %v567_v46  ;;  %v1938_v8 = vor.u32 %v2324_v26, %v1937_v1  ;;  %v2288_v55 = vld [vmem:[%s3748_s3 + $0x34] sm:$0xf0]  ;;  %v1814_v25 = vor.u32 %v2290_v28, %v1811_v41  ;;  %v1942_v0 = vor.u32 %v2322_v39, %v1939_v11  ;;  %v1921_v62 = vld [vmem:[%s3748_s3 + $0x128] sm:$0xf]  ;;  %v2286_v29 = vld [vmem:[%s3748_s3 + $0x2c] sm:$0xf] }
  0xbd   :  { %v3253_v36 = vpack.c.bf16 %v568_v61, %v568_v61  ;;  %1020 = vmatpush.bf16.msrb.mxu0 %v1842_v18  ;;  %1033 = vmatpush.bf16.msrb.mxu1 %v1970_v17  ;;  %v2320_v16 = vld [vmem:[%s3748_s3 + $0x134] sm:$0xf0]  ;;  %v1795_v21 = vld [vmem:[%s3748_s3 + $0x38] sm:$0xf0]  ;;  %v2318_v20 = vld [vmem:[%s3748_s3 + $0x12c] sm:$0xf]  ;;  %v1794_v32 = vor.u32 %v2288_v55, %v1793_v48 }
  0xbe   :  { %1046 = vmatpush.bf16.msrb.mxu2 %v1846_v40  ;;  %1059 = vmatpush.bf16.msrb.mxu3 %v1974_v37  ;;  %v1923_v30 = vld [vmem:[%s3748_s3 + $0x138] sm:$0xf0]  ;;  %v1922_v33 = vor.u32 %v2320_v16, %v1921_v62  ;;  %v1777_v6 = vld [vmem:[%s3748_s3 + $0x8] sm:$0xf]  ;;  %v2284_v7 = vld [vmem:[%s3748_s3 + $0x14] sm:$0xf0]  ;;  %v1798_v13 = vor.u32 %v2286_v29, %v1795_v21 }
  0xbf   :  { %973 = vmatmul.bf16.vlgmr.msra.gmra.mxu0 %v3251_v35  ;;  %986 = vmatmul.bf16.vlgmr.msra.gmra.mxu1 %v3253_v36  ;;  %v1905_v3 = vld [vmem:[%s3748_s3 + $0x108] sm:$0xf]  ;;  %v1926_v42 = vor.u32 %v2318_v20, %v1923_v30  ;;  %v2316_v43 = vld [vmem:[%s3748_s3 + $0x114] sm:$0xf0]  ;;  %v2282_v45 = vld [vmem:[%s3748_s3 + $0xc] sm:$0xf]  ;;  %v1778_v24 = vor.u32 %v2284_v7, %v1777_v6 }
  0xc0   :  { %999 = vmatmul.bf16.vlgmr.msra.gmra.mxu2 %v3251_v35  ;;  %1012 = vmatmul.bf16.vlgmr.msra.gmra.mxu3 %v3253_v36  ;;  %v1779_v47 = vld [vmem:[%s3748_s3 + $0x18] sm:$0xf0]  ;;  %v2314_v51 = vld [vmem:[%s3748_s3 + $0x10c] sm:$0xf]  ;;  %v2081_v4 = vld [vmem:[%s3751_s6 + $0x70] sm:$0xf]  ;;  %v1906_v15 = vor.u32 %v2316_v43, %v1905_v3 }
  0xc1   :  { %1021 = vmatpush.bf16.msrb.mxu0 %v1826_v44  ;;  %1034 = vmatpush.bf16.msrb.mxu1 %v1954_v23  ;;  %v1907_v52 = vld [vmem:[%s3748_s3 + $0x118] sm:$0xf0]  ;;  %v2392_v53 = vld [vmem:[%s3751_s6 + $0x74] sm:$0xf0]  ;;  %v2391_v12 = vld [vmem:[%s3751_s6 + $0x74] sm:$0xf]  ;;  %v1782_v31 = vor.u32 %v2282_v45, %v1779_v47 }
  0xc2   :  { %1047 = vmatpush.bf16.msrb.mxu2 %v1830_v10  ;;  %1060 = vmatpush.bf16.msrb.mxu3 %v1958_v27  ;;  %v2083_v14 = vld [vmem:[%s3751_s6 + $0x78] sm:$0xf0]  ;;  %v1910_v54 = vor.u32 %v2314_v51, %v1907_v52  ;;  %v2073_v56 = vld [vmem:[%s3751_s6 + $0x60] sm:$0xf]  ;;  %v2145_v57 = vld [vmem:[%s3751_s6 + $0xf0] sm:$0xf]  ;;  %v2082_v58 = vor.u32 %v2392_v53, %v2081_v4 }
  0xc3   :  { %v2086_v59 = vor.u32 %v2391_v12, %v2083_v14  ;;  %v2408_v18 = vld [vmem:[%s3751_s6 + $0xf4] sm:$0xf0]  ;;  %v2407_v17 = vld [vmem:[%s3751_s6 + $0xf4] sm:$0xf]  ;;  %v2147_v49 = vld [vmem:[%s3751_s6 + $0xf8] sm:$0xf0] }
  0xc4   :  { %v2390_v60 = vld [vmem:[%s3751_s6 + $0x64] sm:$0xf0]  ;;  %v2389_v50 = vld [vmem:[%s3751_s6 + $0x64] sm:$0xf]  ;;  %v2075_v22 = vld [vmem:[%s3751_s6 + $0x68] sm:$0xf0]  ;;  %v2146_v46 = vor.u32 %v2408_v18, %v2145_v57  ;;  %v2150_v40 = vor.u32 %v2407_v17, %v2147_v49 }
  0xc5   :  { %1022 = vmatpush.bf16.msrb.mxu0 %v1810_v2  ;;  %1035 = vmatpush.bf16.msrb.mxu1 %v1938_v8  ;;  %v2065_v37 = vld [vmem:[%s3751_s6 + $0x50] sm:$0xf]  ;;  %v2137_v38 = vld [vmem:[%s3751_s6 + $0xe0] sm:$0xf]  ;;  %v2074_v63 = vor.u32 %v2390_v60, %v2073_v56  ;;  %v2078_v61 = vor.u32 %v2389_v50, %v2075_v22  ;;  %v2406_v34 = vld [vmem:[%s3751_s6 + $0xe4] sm:$0xf0] }
  0xc6   :  { %1048 = vmatpush.bf16.msrb.mxu2 %v1814_v25  ;;  %1061 = vmatpush.bf16.msrb.mxu3 %v1942_v0  ;;  %v2405_v5 = vld [vmem:[%s3751_s6 + $0xe4] sm:$0xf]  ;;  %v2139_v44 = vld [vmem:[%s3751_s6 + $0xe8] sm:$0xf0]  ;;  %v2388_v23 = vld [vmem:[%s3751_s6 + $0x54] sm:$0xf0]  ;;  %v2138_v10 = vor.u32 %v2406_v34, %v2137_v38 }
  0xc7   :  { %v2387_v9 = vld [vmem:[%s3751_s6 + $0x54] sm:$0xf]  ;;  %v2067_v19 = vld [vmem:[%s3751_s6 + $0x58] sm:$0xf0]  ;;  %v2142_v27 = vor.u32 %v2405_v5, %v2139_v44  ;;  %v2057_v1 = vld [vmem:[%s3751_s6 + $0x40] sm:$0xf]  ;;  %v2066_v28 = vor.u32 %v2388_v23, %v2065_v37 }
  0xc8   :  { %v2129_v26 = vld [vmem:[%s3751_s6 + $0xd0] sm:$0xf]  ;;  %v2070_v41 = vor.u32 %v2387_v9, %v2067_v19  ;;  %v2404_v39 = vld [vmem:[%s3751_s6 + $0xd4] sm:$0xf0]  ;;  %v2403_v11 = vld [vmem:[%s3751_s6 + $0xd4] sm:$0xf] }
  0xc9   :  { %1023 = vmatpush.bf16.msrb.mxu0 %v1794_v32  ;;  %1036 = vmatpush.bf16.msrb.mxu1 %v1922_v33  ;;  %v2131_v2 = vld [vmem:[%s3751_s6 + $0xd8] sm:$0xf0]  ;;  %v2386_v8 = vld [vmem:[%s3751_s6 + $0x44] sm:$0xf0]  ;;  %v2385_v48 = vld [vmem:[%s3751_s6 + $0x44] sm:$0xf]  ;;  %v2130_v25 = vor.u32 %v2404_v39, %v2129_v26 }
  0xca   :  { %1049 = vmatpush.bf16.msrb.mxu2 %v1798_v13  ;;  %1062 = vmatpush.bf16.msrb.mxu3 %v1926_v42  ;;  %v2059_v55 = vld [vmem:[%s3751_s6 + $0x48] sm:$0xf0]  ;;  %v2134_v0 = vor.u32 %v2403_v11, %v2131_v2  ;;  %v2049_v62 = vld [vmem:[%s3751_s6 + $0x30] sm:$0xf]  ;;  %v2121_v16 = vld [vmem:[%s3751_s6 + $0xc0] sm:$0xf]  ;;  %v2058_v29 = vor.u32 %v2386_v8, %v2057_v1 }
  0xcb   :  { %v2062_v21 = vor.u32 %v2385_v48, %v2059_v55  ;;  %v2402_v20 = vld [vmem:[%s3751_s6 + $0xc4] sm:$0xf0]  ;;  %v2401_v30 = vld [vmem:[%s3751_s6 + $0xc4] sm:$0xf]  ;;  %v2123_v32 = vld [vmem:[%s3751_s6 + $0xc8] sm:$0xf0] }
  0xcc   :  { %v2384_v33 = vld [vmem:[%s3751_s6 + $0x34] sm:$0xf0]  ;;  %v2383_v6 = vld [vmem:[%s3751_s6 + $0x34] sm:$0xf]  ;;  %v2051_v7 = vld [vmem:[%s3751_s6 + $0x38] sm:$0xf0]  ;;  %v2122_v3 = vor.u32 %v2402_v20, %v2121_v16  ;;  %v2126_v13 = vor.u32 %v2401_v30, %v2123_v32 }
  0xcd   :  { %1024 = vmatpush.bf16.msrb.mxu0 %v1778_v24  ;;  %1037 = vmatpush.bf16.msrb.mxu1 %v1906_v15  ;;  %v2050_v42 = vor.u32 %v2384_v33, %v2049_v62  ;;  %v2054_v43 = vor.u32 %v2383_v6, %v2051_v7  ;;  %v2041_v45 = vld [vmem:[%s3751_s6 + $0x20] sm:$0xf]  ;;  %v2382_v47 = vld [vmem:[%s3751_s6 + $0x24] sm:$0xf0]  ;;  %v2381_v51 = vld [vmem:[%s3751_s6 + $0x24] sm:$0xf] }
  0xce   :  { %1050 = vmatpush.bf16.msrb.mxu2 %v1782_v31  ;;  %1063 = vmatpush.bf16.msrb.mxu3 %v1910_v54  ;;  %v2042_v52 = vor.u32 %v2382_v47, %v2041_v45  ;;  %v2043_v4 = vld [vmem:[%s3751_s6 + $0x28] sm:$0xf0]  ;;  %v2113_v12 = vld [vmem:[%s3751_s6 + $0xb0] sm:$0xf]  ;;  %v2400_v14 = vld [vmem:[%s3751_s6 + $0xb4] sm:$0xf0] }
  0xcf   :  { %v2046_v53 = vor.u32 %v2381_v51, %v2043_v4  ;;  %v2399_v24 = vld [vmem:[%s3751_s6 + $0xb4] sm:$0xf]  ;;  %v2114_v15 = vor.u32 %v2400_v14, %v2113_v12  ;;  %v2115_v31 = vld [vmem:[%s3751_s6 + $0xb8] sm:$0xf0]  ;;  %v2033_v56 = vld [vmem:[%s3751_s6 + $0x10] sm:$0xf] }
  0xd0   :  { %1025 = vmatmul.bf16.vlgmr.msrb.gmra.mxu0 %v3251_v35  ;;  %1038 = vmatmul.bf16.vlgmr.msrb.gmra.mxu1 %v3253_v36  ;;  %v2118_v54 = vor.u32 %v2399_v24, %v2115_v31  ;;  %v2380_v57 = vld [vmem:[%s3751_s6 + $0x14] sm:$0xf0]  ;;  %v2035_v18 = vld [vmem:[%s3751_s6 + $0x18] sm:$0xf0]  ;;  %v2105_v49 = vld [vmem:[%s3751_s6 + $0xa0] sm:$0xf] }
  0xd1   :  { %1297 = vmatpush.bf16.msra.mxu0 %v2082_v58  ;;  %1051 = vmatmul.bf16.vlgmr.msrb.gmra.mxu2 %v3251_v35  ;;  %v2379_v58 = vld [vmem:[%s3751_s6 + $0x14] sm:$0xf]  ;;  %v2398_v60 = vld [vmem:[%s3751_s6 + $0xa4] sm:$0xf0]  ;;  %v2397_v50 = vld [vmem:[%s3751_s6 + $0xa4] sm:$0xf] }
  0xd2   :  { %1323 = vmatpush.bf16.msra.mxu2 %v2086_v59  ;;  %1064 = vmatmul.bf16.vlgmr.msrb.gmra.mxu3 %v3253_v36  ;;  %v2034_v59 = vor.u32 %v2380_v57, %v2033_v56  ;;  %v2038_v17 = vor.u32 %v2379_v58, %v2035_v18  ;;  %v2106_v22 = vor.u32 %v2398_v60, %v2105_v49  ;;  %v2025_v37 = vld [vmem:[%s3751_s6] sm:$0xf]  ;;  %v2378_v38 = vld [vmem:[%s3751_s6 + $0x4] sm:$0xf0]  ;;  %v2027_v34 = vld [vmem:[%s3751_s6 + $0x8] sm:$0xf0] }
  0xd3   :  { %1310 = vmatpush.bf16.msra.mxu1 %v2146_v46  ;;  %1336 = vmatpush.bf16.msra.mxu3 %v2150_v40  ;;  %v2107_v46 = vld [vmem:[%s3751_s6 + $0xa8] sm:$0xf0]  ;;  %v2209_v5 = vld [vmem:[%s3750_s5 + $0x70] sm:$0xf]  ;;  %v2360_v44 = vld [vmem:[%s3750_s5 + $0x74] sm:$0xf0] }
  0xd4   :  { %v2110_v40 = vor.u32 %v2397_v50, %v2107_v46  ;;  %v2210_v9 = vor.u32 %v2360_v44, %v2209_v5  ;;  %v2359_v19 = vld [vmem:[%s3750_s5 + $0x74] sm:$0xf]  ;;  %v2396_v26 = vld [vmem:[%s3751_s6 + $0x94] sm:$0xf0]  ;;  %v2201_v2 = vld [vmem:[%s3750_s5 + $0x60] sm:$0xf] }
  0xd5   :  { %1298 = vmatpush.bf16.msra.mxu0 %v2074_v63  ;;  %v2377_v63 = vld [vmem:[%s3751_s6 + $0x4] sm:$0xf]  ;;  %v2358_v8 = vld [vmem:[%s3750_s5 + $0x64] sm:$0xf0]  ;;  %v2089_v62 = vld [vmem:[%s3751_s6 + $0x80] sm:$0xf] }
  0xd6   :  { %1324 = vmatpush.bf16.msra.mxu2 %v2078_v61  ;;  %v2026_v61 = vor.u32 %v2378_v38, %v2025_v37  ;;  %v2030_v23 = vor.u32 %v2377_v63, %v2027_v34  ;;  %v2357_v48 = vld [vmem:[%s3750_s5 + $0x64] sm:$0xf]  ;;  %v2202_v55 = vor.u32 %v2358_v8, %v2201_v2  ;;  %v2394_v16 = vld [vmem:[%s3751_s6 + $0x84] sm:$0xf0]  ;;  %v2091_v20 = vld [vmem:[%s3751_s6 + $0x88] sm:$0xf0] }
  0xd7   :  { %1311 = vmatpush.bf16.msra.mxu1 %v2138_v10  ;;  %1337 = vmatpush.bf16.msra.mxu3 %v2142_v27  ;;  %v2211_v10 = vld [vmem:[%s3750_s5 + $0x78] sm:$0xf0]  ;;  %v2097_v27 = vld [vmem:[%s3751_s6 + $0x90] sm:$0xf]  ;;  %v2376_v32 = vld [vmem:[%s3750_s5 + $0xf4] sm:$0xf0] }
  0xd8   :  { %v2214_v1 = vor.u32 %v2359_v19, %v2211_v10  ;;  %v2098_v39 = vor.u32 %v2396_v26, %v2097_v27  ;;  %v2273_v30 = vld [vmem:[%s3750_s5 + $0xf0] sm:$0xf]  ;;  %v2375_v7 = vld [vmem:[%s3750_s5 + $0xf4] sm:$0xf]  ;;  %v2195_v51 = vld [vmem:[%s3750_s5 + $0x58] sm:$0xf0] }
  0xd9   :  { %1299 = vmatpush.bf16.msra.mxu0 %v2066_v28  ;;  %v2395_v28 = vld [vmem:[%s3751_s6 + $0x94] sm:$0xf]  ;;  %v2274_v6 = vor.u32 %v2376_v32, %v2273_v30  ;;  %v2265_v4 = vld [vmem:[%s3750_s5 + $0xe0] sm:$0xf]  ;;  %v2373_v12 = vld [vmem:[%s3750_s5 + $0xe4] sm:$0xf] }
  0xda   :  { %1325 = vmatpush.bf16.msra.mxu2 %v2070_v41  ;;  %v2099_v41 = vld [vmem:[%s3751_s6 + $0x98] sm:$0xf0]  ;;  %v2355_v45 = vld [vmem:[%s3750_s5 + $0x54] sm:$0xf]  ;;  %v2267_v24 = vld [vmem:[%s3750_s5 + $0xe8] sm:$0xf0] }
  0xdb   :  { %1312 = vmatpush.bf16.msra.mxu1 %v2130_v25  ;;  %1338 = vmatpush.bf16.msra.mxu3 %v2134_v0  ;;  %v2102_v11 = vor.u32 %v2395_v28, %v2099_v41  ;;  %v2203_v25 = vld [vmem:[%s3750_s5 + $0x68] sm:$0xf0]  ;;  %v2185_v31 = vld [vmem:[%s3750_s5 + $0x40] sm:$0xf]  ;;  %v2353_v56 = vld [vmem:[%s3750_s5 + $0x44] sm:$0xf] }
  0xdc   :  { %v2206_v0 = vor.u32 %v2357_v48, %v2203_v25  ;;  %v2187_v58 = vld [vmem:[%s3750_s5 + $0x48] sm:$0xf0]  ;;  %v2257_v18 = vld [vmem:[%s3750_s5 + $0xd0] sm:$0xf]  ;;  %v2371_v49 = vld [vmem:[%s3750_s5 + $0xd4] sm:$0xf] }
  0xdd   :  { %1300 = vmatpush.bf16.msra.mxu0 %v2058_v29  ;;  %v2393_v29 = vld [vmem:[%s3751_s6 + $0x84] sm:$0xf]  ;;  %v2259_v50 = vld [vmem:[%s3750_s5 + $0xd8] sm:$0xf0]  ;;  %v2177_v46 = vld [vmem:[%s3750_s5 + $0x30] sm:$0xf] }
  0xde   :  { %1326 = vmatpush.bf16.msra.mxu2 %v2062_v21  ;;  %v2090_v21 = vor.u32 %v2394_v16, %v2089_v62  ;;  %v2094_v33 = vor.u32 %v2393_v29, %v2091_v20  ;;  %v2351_v37 = vld [vmem:[%s3750_s5 + $0x34] sm:$0xf]  ;;  %v2179_v63 = vld [vmem:[%s3750_s5 + $0x38] sm:$0xf0]  ;;  %v2249_v34 = vld [vmem:[%s3750_s5 + $0xc0] sm:$0xf] }
  0xdf   :  { %1313 = vmatpush.bf16.msra.mxu1 %v2122_v3  ;;  %1339 = vmatpush.bf16.msra.mxu3 %v2126_v13  ;;  %v2275_v3 = vld [vmem:[%s3750_s5 + $0xf8] sm:$0xf0]  ;;  %v2370_v5 = vld [vmem:[%s3750_s5 + $0xc4] sm:$0xf0]  ;;  %v2369_v44 = vld [vmem:[%s3750_s5 + $0xc4] sm:$0xf] }
  0xe0   :  { %v2278_v13 = vor.u32 %v2375_v7, %v2275_v3  ;;  %v2169_v10 = vld [vmem:[%s3750_s5 + $0x20] sm:$0xf]  ;;  %v2350_v27 = vld [vmem:[%s3750_s5 + $0x24] sm:$0xf0]  ;;  %v2171_v28 = vld [vmem:[%s3750_s5 + $0x28] sm:$0xf0] }
  0xe1   :  { %1301 = vmatpush.bf16.msra.mxu0 %v2050_v42  ;;  %v2193_v42 = vld [vmem:[%s3750_s5 + $0x50] sm:$0xf]  ;;  %v2170_v26 = vor.u32 %v2350_v27, %v2169_v10  ;;  %v2367_v2 = vld [vmem:[%s3750_s5 + $0xb4] sm:$0xf]  ;;  %v2243_v48 = vld [vmem:[%s3750_s5 + $0xb8] sm:$0xf0] }
  0xe2   :  { %1327 = vmatpush.bf16.msra.mxu2 %v2054_v43  ;;  %v2356_v43 = vld [vmem:[%s3750_s5 + $0x54] sm:$0xf0]  ;;  %v2161_v62 = vld [vmem:[%s3750_s5 + $0x10] sm:$0xf]  ;;  %v2347_v29 = vld [vmem:[%s3750_s5 + $0x14] sm:$0xf] }
  0xe3   :  { %1314 = vmatpush.bf16.msra.mxu1 %v2114_v15  ;;  %1340 = vmatpush.bf16.msra.mxu3 %v2118_v54  ;;  %v2194_v47 = vor.u32 %v2356_v43, %v2193_v42  ;;  %v2270_v15 = vor.u32 %v2373_v12, %v2267_v24  ;;  %v2354_v54 = vld [vmem:[%s3750_s5 + $0x44] sm:$0xf0]  ;;  %v2348_v16 = vld [vmem:[%s3750_s5 + $0x14] sm:$0xf0]  ;;  %v2163_v20 = vld [vmem:[%s3750_s5 + $0x18] sm:$0xf0] }
  0xe4   :  { %v2186_v57 = vor.u32 %v2354_v54, %v2185_v31  ;;  %v2233_v30 = vld [vmem:[%s3750_s5 + $0xa0] sm:$0xf]  ;;  %v2366_v32 = vld [vmem:[%s3750_s5 + $0xa4] sm:$0xf0]  ;;  %v2365_v7 = vld [vmem:[%s3750_s5 + $0xa4] sm:$0xf] }
  0xe5   :  { %1302 = vmatpush.bf16.msra.mxu0 %v2042_v52  ;;  %v2198_v52 = vor.u32 %v2355_v45, %v2195_v51  ;;  %v2235_v3 = vld [vmem:[%s3750_s5 + $0xa8] sm:$0xf0]  ;;  %v2346_v43 = vld [vmem:[%s3750_s5 + $0x4] sm:$0xf0]  ;;  %v2345_v45 = vld [vmem:[%s3750_s5 + $0x4] sm:$0xf] }
  0xe6   :  { %1328 = vmatpush.bf16.msra.mxu2 %v2046_v53  ;;  %v2374_v53 = vld [vmem:[%s3750_s5 + $0xe4] sm:$0xf0]  ;;  %v2238_v42 = vor.u32 %v2365_v7, %v2235_v3  ;;  %v2363_v12 = vld [vmem:[%s3750_s5 + $0x94] sm:$0xf]  ;;  %vm1681_vm0 = vcmask 1024   ;;  %s1758_s3 = sshll.u32 %s3755_s10, 4  ;;  %s1759_s3 = int_to_ptr.hbm [resolvable:$true] %s1758_s3 }
  0xe7   :  { %1315 = vmatpush.bf16.msra.mxu1 %v2106_v22  ;;  %1341 = vmatpush.bf16.msra.mxu3 %v2110_v40  ;;  %v2266_v14 = vor.u32 %v2374_v53, %v2265_v4  ;;  %v2262_v22 = vor.u32 %v2371_v49, %v2259_v50  ;;  %v2352_v40 = vld [vmem:[%s3750_s5 + $0x34] sm:$0xf0]  ;;  %v2225_v4 = vld [vmem:[%s3750_s5 + $0x90] sm:$0xf] }
  0xe8   :  { %v2178_v38 = vor.u32 %v2352_v40, %v2177_v46  ;;  %v2364_v53 = vld [vmem:[%s3750_s5 + $0x94] sm:$0xf0] }
  0xe9   :  { %1303 = vmatpush.bf16.msra.mxu0 %v2034_v59  ;;  %v2190_v59 = vor.u32 %v2353_v56, %v2187_v58  ;;  %v2226_v24 = vor.u32 %v2364_v53, %v2225_v4  ;;  %v635_v56 = vld [vmem:[%s3749_s4] sm:$0xf] }
  0xea   :  { %1329 = vmatpush.bf16.msra.mxu2 %v2038_v17  ;;  %v2372_v17 = vld [vmem:[%s3750_s5 + $0xd4] sm:$0xf0]  ;;  %v639_v46 = vperm.slane %v635_v56, 2 }
  0xeb   :  { %1316 = vmatpush.bf16.msra.mxu1 %v2098_v39  ;;  %1342 = vmatpush.bf16.msra.mxu3 %v2102_v11  ;;  %v2258_v60 = vor.u32 %v2372_v17, %v2257_v18  ;;  %v2241_v39 = vld [vmem:[%s3750_s5 + $0xb0] sm:$0xf]  ;;  %v2368_v11 = vld [vmem:[%s3750_s5 + $0xb4] sm:$0xf0]  ;;  %v2362_v18 = vld [vmem:[%s3750_s5 + $0x84] sm:$0xf0] }
  0xec   :  { %v2242_v8 = vor.u32 %v2368_v11, %v2241_v39  ;;  %v2361_v17 = vld [vmem:[%s3750_s5 + $0x84] sm:$0xf] }
  0xed   :  { %1304 = vmatpush.bf16.msra.mxu0 %v2026_v61  ;;  %v2182_v61 = vor.u32 %v2351_v37, %v2179_v63 }
  0xee   :  { %1330 = vmatpush.bf16.msra.mxu2 %v2030_v23  ;;  %v2250_v23 = vor.u32 %v2370_v5, %v2249_v34  ;;  %v638_v5 = vperm.slane %v635_v56, 1 }
  0xef   :  { %1317 = vmatpush.bf16.msra.mxu1 %v2090_v21  ;;  %1343 = vmatpush.bf16.msra.mxu3 %v2094_v33  ;;  %v2162_v21 = vor.u32 %v2348_v16, %v2161_v62  ;;  %v2166_v33 = vor.u32 %v2347_v29, %v2163_v20 }
  0xf1   :  { %1515 = vmatpush.bf16.msrb.mxu0 %v2210_v9  ;;  %v2251_v9 = vld [vmem:[%s3750_s5 + $0xc8] sm:$0xf0] }
  0xf2   :  { %1541 = vmatpush.bf16.msrb.mxu2 %v2214_v1  ;;  %v2254_v19 = vor.u32 %v2369_v44, %v2251_v9  ;;  %v2349_v1 = vld [vmem:[%s3750_s5 + $0x24] sm:$0xf]  ;;  %v640_v9 = vperm.slane %v635_v56, 3 }
  0xf3   :  { %1528 = vmatpush.bf16.msrb.mxu1 %v2274_v6  ;;  %1554 = vmatpush.bf16.msrb.mxu3 %v2278_v13  ;;  %v2174_v41 = vor.u32 %v2349_v1, %v2171_v28  ;;  %v2234_v6 = vor.u32 %v2366_v32, %v2233_v30  ;;  %v2153_v13 = vld [vmem:[%s3750_s5] sm:$0xf] }
  0xf4   :  { %v2154_v51 = vor.u32 %v2346_v43, %v2153_v13 }
  0xf5   :  { %1516 = vmatpush.bf16.msrb.mxu0 %v2202_v55 }
  0xf6   :  { %1542 = vmatpush.bf16.msrb.mxu2 %v2206_v0  ;;  %v2246_v0 = vor.u32 %v2367_v2, %v2243_v48 }
  0xf7   :  { %1529 = vmatpush.bf16.msrb.mxu1 %v2266_v14  ;;  %1555 = vmatpush.bf16.msrb.mxu3 %v2270_v15  ;;  %v2227_v14 = vld [vmem:[%s3750_s5 + $0x98] sm:$0xf0] }
  0xf8   :  { %v2230_v15 = vor.u32 %v2363_v12, %v2227_v14 }
  0xf9   :  { %1517 = vmatpush.bf16.msrb.mxu0 %v2194_v47  ;;  %v2155_v47 = vld [vmem:[%s3750_s5 + $0x8] sm:$0xf0] }
  0xfa   :  { %1543 = vmatpush.bf16.msrb.mxu2 %v2198_v52  ;;  %v2158_v52 = vor.u32 %v2345_v45, %v2155_v47 }
  0xfb   :  { %1530 = vmatpush.bf16.msrb.mxu1 %v2258_v60  ;;  %1556 = vmatpush.bf16.msrb.mxu3 %v2262_v22  ;;  %v2219_v60 = vld [vmem:[%s3750_s5 + $0x88] sm:$0xf0]  ;;  %v637_v22 = vperm.slane %v635_v56, 0 }
  0xfc   :  { %v2222_v50 = vor.u32 %v2361_v17, %v2219_v60 }
  0xfd   :  { %1518 = vmatpush.bf16.msrb.mxu0 %v2186_v57 }
  0xfe   :  { %1544 = vmatpush.bf16.msrb.mxu2 %v2190_v59  ;;  %v2217_v59 = vld [vmem:[%s3750_s5 + $0x80] sm:$0xf] }
  0xff   :  { %1531 = vmatpush.bf16.msrb.mxu1 %v2250_v23  ;;  %1557 = vmatpush.bf16.msrb.mxu3 %v2254_v19  ;;  %v2218_v49 = vor.u32 %v2362_v18, %v2217_v59 }
 0x101   :  { %1519 = vmatpush.bf16.msrb.mxu0 %v2178_v38 }
 0x102   :  { %1545 = vmatpush.bf16.msrb.mxu2 %v2182_v61 }
 0x103   :  { %1532 = vmatpush.bf16.msrb.mxu1 %v2242_v8  ;;  %1558 = vmatpush.bf16.msrb.mxu3 %v2246_v0 }
 0x105   :  { %1520 = vmatpush.bf16.msrb.mxu0 %v2170_v26 }
 0x106   :  { %1546 = vmatpush.bf16.msrb.mxu2 %v2174_v41 }
 0x107   :  { %1533 = vmatpush.bf16.msrb.mxu1 %v2234_v6  ;;  %1559 = vmatpush.bf16.msrb.mxu3 %v2238_v42 }
 0x109   :  { %1521 = vmatpush.bf16.msrb.mxu0 %v2162_v21 }
 0x10a   :  { %1547 = vmatpush.bf16.msrb.mxu2 %v2166_v33  ;;  %v1567_v33 = vld [vmem:[%s3752_s7] sm:$0x3] }
 0x10b   :  { %1534 = vmatpush.bf16.msrb.mxu1 %v2226_v24  ;;  %1560 = vmatpush.bf16.msrb.mxu3 %v2230_v15 }
 0x10d   :  { %1522 = vmatpush.bf16.msrb.mxu0 %v2154_v51 }
 0x10e   :  { %1548 = vmatpush.bf16.msrb.mxu2 %v2158_v52 }
 0x10f   :  { %1535 = vmatpush.bf16.msrb.mxu1 %v2218_v49  ;;  %1561 = vmatpush.bf16.msrb.mxu3 %v2222_v50 }
 0x13c   :  { %v974_v55 = vpop.f32.mrf.mxu0  ;;  %v987_v25 = vpop.f32.mrf.mxu1 }
 0x13d   :  { %v975_v38 = vadd.f32 %v974_v55, %v637_v22  ;;  %v1613_v22 = vld [vmem:[%s3753_s8] sm:$0x3] }
 0x13f   :  { %v988_v44 = vadd.f32 %v987_v25, %v975_v38  ;;  %v1615_v38 = vperm.slane %v1613_v22, 0 }
 0x143   :  { %v1000_v31 = vpop.f32.mrf.mxu2  ;;  %v1013_v54 = vpop.f32.mrf.mxu3 }
 0x144   :  { %v976_v57 = vpop.f32.mrf.mxu0  ;;  %v989_v58 = vpop.f32.mrf.mxu1  ;;  %v1001_v10 = vadd.f32 %v1000_v31, %v638_v5 }
 0x145   :  { %v1570_v58 = vperm.slane %v1567_v33, 1 }
 0x146   :  { %v1014_v11 = vadd.f32 %v1013_v54, %v1001_v10 }
 0x14b   :  { %v1002_v40 = vpop.f32.mrf.mxu2  ;;  %v1015_v37 = vpop.f32.mrf.mxu3 }
 0x14d   :  { %v1026_v63 = vpop.f32.mrf.mxu0  ;;  %v1039_v61 = vpop.f32.mrf.mxu1 }
 0x14e   :  { %v1027_v34 = vadd.f32 %v1026_v63, %v639_v46 }
 0x150   :  { %v1040_v23 = vadd.f32 %v1039_v61, %v1027_v34 }
 0x152   :  { %v1069_v19 = vsel %vm293_vm1, %v988_v44, %v1040_v23 }
 0x153   :  { %v1071_v27 = vpack.c.bf16 %v1069_v19, %v1069_v19 }
 0x154   :  { %v1052_v1 = vpop.f32.mrf.mxu2 }
 0x155   :  { %v1065_v26 = vpop.f32.mrf.mxu3  ;;  %v1053_v28 = vadd.f32 %v1052_v1, %v640_v9  ;;  %v1028_v41 = vpop.f32.mrf.mxu0  ;;  %1305 = vmatmul.bf16.vlgmr.msra.gmra.mxu0 %v1071_v27  ;;  %1331 = vmatmul.bf16.vlgmr.msra.gmra.mxu2 %v1071_v27 }
 0x156   :  { %v1041_v39 = vpop.f32.mrf.mxu1 }
 0x157   :  { %v1066_v2 = vadd.f32 %v1065_v26, %v1053_v28 }
 0x159   :  { %v1070_v8 = vsel %vm293_vm1, %v1014_v11, %v1066_v2  ;;  %v1616_v2 = vperm.slane %v1613_v22, 1 }
 0x15a   :  { %v1072_v48 = vpack.c.bf16 %v1070_v8, %v1070_v8 }
 0x15c   :  { %v1054_v55 = vpop.f32.mrf.mxu2  ;;  %1318 = vmatmul.bf16.vlgmr.msra.gmra.mxu1 %v1072_v48  ;;  %1344 = vmatmul.bf16.vlgmr.msra.gmra.mxu3 %v1072_v48 }
 0x15d   :  { %v1067_v25 = vpop.f32.mrf.mxu3 }
 0x165   :  { %1523 = vmatmul.bf16.vlgmr.msrb.gmra.mxu0 %v3251_v35  ;;  %1549 = vmatmul.bf16.vlgmr.msrb.gmra.mxu2 %v3251_v35  ;;  %v1569_v35 = vperm.slane %v1567_v33, 0 }
 0x16c   :  { %1536 = vmatmul.bf16.vlgmr.msrb.gmra.mxu1 %v3253_v36  ;;  %1562 = vmatmul.bf16.vlgmr.msrb.gmra.mxu3 %v3253_v36 }
 0x1d2   :  { %v1306_v0 = vpop.f32.mrf.mxu0 }
 0x1d8   :  { %v1332_v62 = vpop.f32.mrf.mxu2 }
 0x1d9   :  { %v1319_v16 = vpop.f32.mrf.mxu1 }
 0x1da   :  { %v1308_v29 = vpop.f32.mrf.mxu0  ;;  %v1320_v6 = vadd.f32 %v1319_v16, %v1306_v0 }
 0x1df   :  { %v1345_v21 = vpop.f32.mrf.mxu3 }
 0x1e0   :  { %v1334_v20 = vpop.f32.mrf.mxu2  ;;  %v1346_v47 = vadd.f32 %v1345_v21, %v1332_v62  ;;  %v2419_v62 = vld [vmem:[%s3754_s9] ss:$0 sm:$0xff] }
 0x1e1   :  { %v1321_v30 = vpop.f32.mrf.mxu1 }
 0x1e2   :  { %v1524_v32 = vpop.f32.mrf.mxu0  ;;  %v1350_v12 = vrot.slane %v1346_v47, 2  ;;  %v1352_v14 = vrot.slane %v1346_v47, 6 }
 0x1e3   :  { %v1525_v3 = vadd.f32 %v1524_v32, %v1320_v6 }
 0x1e4   :  { %v1354_v15 = vsel %vm293_vm1, %v1350_v12, %v1352_v14 }
 0x1e7   :  { %v1347_v7 = vpop.f32.mrf.mxu3 }
 0x1e8   :  { %v1550_v13 = vpop.f32.mrf.mxu2 }
 0x1e9   :  { %v1537_v42 = vpop.f32.mrf.mxu1  ;;  %v1551_v54 = vadd.f32 %v1550_v13, %v1354_v15 }
 0x1ea   :  { %v1538_v43 = vadd.f32 %v1537_v42, %v1525_v3  ;;  %v1526_v36 = vpop.f32.mrf.mxu0 }
 0x1ec   :  { %v1573_v45 = vadd.f32 %v1569_v35, %v1538_v43 }
 0x1ee   :  { %v2279_v51 = vmul.f32 -1.442695, %v1573_v45 }
 0x1ef   :  { %v1563_v52 = vpop.f32.mrf.mxu3 }
 0x1f0   :  { %2420 = vpow2.f32 %v2279_v51  ;;  %v1552_v4 = vpop.f32.mrf.mxu2  ;;  %v1564_v57 = vadd.f32 %v1563_v52, %v1551_v54 }
 0x1f1   :  { %v1539_v53 = vpop.f32.mrf.mxu1 }
 0x1f2   :  { %v1574_v59 = vadd.f32 %v1570_v58, %v1564_v57 }
 0x1f4   :  { %v2280_v49 = vmul.f32 -1.442695, %v1574_v59 }
 0x1f6   :  { %v2421_v24 = vpop.eup %2420 }
 0x1f7   :  { %v1581_v31 = vadd.f32 1.0, %v2421_v24  ;;  %v1565_v56 = vpop.f32.mrf.mxu3 }
 0x1f9   :  { %2422 = vrcp.f32 %v1581_v31  ;;  %v1594_v50 = vand.u32 2147483648, %v1581_v31  ;;  %v1592_v40 = vand.u32 2147483647, %v1581_v31  ;;  %vm1588_vm4 = vweird.f32 %v1581_v31 }
 0x1fa   :  { %2424 = vpow2.f32 %v2280_v49 }
 0x1fb   :  { %v1595_v63 = vor.u32 1.1754944e-38, %v1594_v50  ;;  %vm1593_vm6 = vcmp.eq.f32.partialorder %v1592_v40, 8.507059e+37 }
 0x1ff   :  { %v2423_v18 = vpop.eup %2422 }
 0x200   :  { %v1584_v17 = vmul.f32 %v2423_v18, %v1581_v31  ;;  %vm1589_vm3 = vweird.f32 %v2423_v18  ;;  %v2425_v44 = vpop.eup %2424 }
 0x201   :  { %vm1590_vm5 = vmor %vm1588_vm4, %vm1589_vm3  ;;  %v1582_v9 = vadd.f32 1.0, %v2425_v44  ;;  %vm1749_vm4 = vcmask 0  }
 0x202   :  { %v1585_v60 = vsub.f32 1.0, %v1584_v17 }
 0x203   :  { %2426 = vrcp.f32 %v1582_v9  ;;  %v1609_v28 = vand.u32 2147483648, %v1582_v9  ;;  %vm1603_vm9 = vweird.f32 %v1582_v9  ;;  %v1607_v41 = vand.u32 2147483647, %v1582_v9 }
 0x204   :  { %v1586_v46 = vmul.f32 %v2423_v18, %v1585_v60 }
 0x205   :  { %v1610_v11 = vor.u32 1.1754944e-38, %v1609_v28  ;;  %vm1608_vm11 = vcmp.eq.f32.partialorder %v1607_v41, 8.507059e+37 }
 0x206   :  { %v1587_v37 = vadd.f32 %v2423_v18, %v1586_v46 }
 0x208   :  { %v1591_v61 = vsel %vm1590_vm5, %v2423_v18, %v1587_v37 }
 0x209   :  { %v1596_v34 = vsel %vm1593_vm6, %v1595_v63, %v1591_v61  ;;  %v2427_v19 = vpop.eup %2426 }
 0x20a   :  { %v1619_v5 = vmul.f32 %v1615_v38, %v1596_v34  ;;  %v1599_v10 = vmul.f32 %v2427_v19, %v1582_v9  ;;  %vm1604_vm8 = vweird.f32 %v2427_v19 }
 0x20b   :  { %vm1605_vm10 = vmor %vm1603_vm9, %vm1604_vm8 }
 0x20c   :  { %1626 = vrot.lane.b32.xlu1 %v1619_v5, %s2473_s17  ;;  %v1622_v23 = vsel %vm1621_vm7, %v1619_v5, 0.0  ;;  %v1600_v27 = vsub.f32 1.0, %v1599_v10 }
 0x20d   :  { %1623 = vadd.xlane.f32.xlu0 %v1622_v23 }
 0x20e   :  { %v1601_v1 = vmul.f32 %v2427_v19, %v1600_v27 }
 0x210   :  { %v1602_v26 = vadd.f32 %v2427_v19, %v1601_v1 }
 0x212   :  { %v1606_v39 = vsel %vm1605_vm10, %v2427_v19, %v1602_v26 }
 0x213   :  { %v1611_v8 = vsel %vm1608_vm11, %v1610_v11, %v1606_v39 }
 0x214   :  { %v1620_v48 = vmul.f32 %v1616_v2, %v1611_v8 }
 0x216   :  { %v1632_v55 = vsel %vm1621_vm7, %v1620_v48, 0.0 }
 0x236   :  { %1633 = vadd.xlane.f32.xlu1 %v1632_v55 }
 0x27e   :  { %v1627_v25 = vpop.permute.xlu1 %1626 }
 0x27f   :  { %v1629_v0 = vsel %vm1621_vm7, %v1627_v25, 0.0  ;;  %v2475_v25 = vmov 2.0  }
 0x280   :  { %1630 = vadd.xlane.f32.xlu2 %v1629_v0  ;;  %v1624_v30 = vpop.xlane.xlu0 %1623 }
 0x298   :  { %1649 = vrot.lane.b32.xlu2 %v2419_v62, %s2474_s18 }
 0x2a9   :  { %v1634_v16 = vpop.xlane.xlu1 %1633 }
 0x2aa   :  { %v1645_v29 = vrot.slane %v1634_v16, 2 }
 0x2ac   :  { %v1647_v32 = vadd.f32 %v1645_v29, %v1634_v16 }
 0x2ae   :  { %v1648_v7 = vmul.f32 0.5, %v1647_v32 }
 0x2f3   :  { %v1631_v21 = vpop.xlane.xlu2 %1630 }
 0x2f4   :  { %v1636_v20 = vrot.slane %v1631_v21, 2 }
 0x2f6   :  { %v1638_v33 = vadd.f32 %v1636_v20, %v1624_v30 }
 0x2f8   :  { %v1643_v6 = vadd.f32 %v2419_v62, %v1638_v33 }
 0x2fa   :  { %v1653_v3 = vsub.f32 0.0, %v1643_v6 }
 0x2fb   :  { %v1650_v35 = vpop.permute.xlu2 %1649 }
 0x2fc   :  { %v1655_v13 = vsub.f32 0.0, %v1653_v3  ;;  %v1668_v42 = vmul.f32 1.442695, %v1653_v3  ;;  %v1652_v43 = vadd.f32 %v1650_v35, %v1648_v7  ;;  %vm1654_vm15 = vcmp.gt.f32.partialorder %v1653_v3, 0.0 }
 0x2fe   :  { %v1656_v36 = vmul.f32 1.442695, %v1655_v13  ;;  %2428 = vpow2.f32 %v1668_v42  ;;  %v1702_v45 = vsub.f32 0.0, %v1652_v43  ;;  %v1715_v47 = vmul.f32 1.442695, %v1652_v43 }
 0x2ff   :  { %vm1701_vm2 = vcmp.gt.f32.partialorder %v1652_v43, 0.0 }
 0x300   :  { %2430 = vpow2.f32 %v1656_v36  ;;  %v1703_v51 = vmul.f32 1.442695, %v1702_v45 }
 0x301   :  { %2432 = vpow2.f32 %v1715_v47 }
 0x302   :  { %2434 = vpow2.f32 %v1703_v51 }
 0x304   :  { %v2429_v52 = vpop.eup %2428 }
 0x305   :  { %v1670_v4 = vadd.f32 1.0, %v2429_v52  ;;  %v1673_v56 = vmul.f32 -0.5, %v2429_v52  ;;  %v1676_v46 = vand.u32 2147483647, %v2429_v52 }
 0x306   :  { %v2431_v53 = vpop.eup %2430 }
 0x307   :  { %v2433_v12 = vpop.eup %2432  ;;  %v1658_v14 = vadd.f32 1.0, %v2431_v53  ;;  %2436 = vlog2.f32 %v1670_v4  ;;  %v1661_v31 = vmul.f32 -0.5, %v2431_v53  ;;  %v1664_v17 = vand.u32 2147483647, %v2431_v53 }
 0x308   :  { %v2435_v24 = vpop.eup %2434  ;;  %v1717_v15 = vadd.f32 1.0, %v2433_v12  ;;  %v1720_v58 = vmul.f32 -0.5, %v2433_v12  ;;  %v1674_v49 = vadd.f32 1.0, %v1673_v56  ;;  %v1723_v5 = vand.u32 2147483647, %v2433_v12 }
 0x309   :  { %v1705_v54 = vadd.f32 1.0, %v2435_v24  ;;  %2438 = vlog2.f32 %v1658_v14  ;;  %v1708_v57 = vmul.f32 -0.5, %v2435_v24  ;;  %v1662_v59 = vadd.f32 1.0, %v1661_v31 }
 0x30a   :  { %2440 = vlog2.f32 %v1717_v15  ;;  %v1711_v22 = vand.u32 2147483647, %v2435_v24  ;;  %v1721_v37 = vadd.f32 1.0, %v1720_v58  ;;  %vm1665_vm12 = vcmp.lt.f32.partialorder %v1664_v17, 0.0004427343 }
 0x30b   :  { %2442 = vlog2.f32 %v1705_v54  ;;  %v1709_v60 = vadd.f32 1.0, %v1708_v57  ;;  %v1663_v63 = vmul.f32 %v2431_v53, %v1662_v59  ;;  %v1675_v44 = vmul.f32 %v2429_v52, %v1674_v49 }
 0x30c   :  { %vm1712_vm13 = vcmp.lt.f32.partialorder %v1711_v22, 0.0004427343  ;;  %vm1677_vm14 = vcmp.lt.f32.partialorder %v1676_v46, 0.0004427343  ;;  %v1722_v26 = vmul.f32 %v2433_v12, %v1721_v37  ;;  %vm1724_vm1 = vcmp.lt.f32.partialorder %v1723_v5, 0.0004427343 }
 0x30d   :  { %v2437_v18 = vpop.eup %2436  ;;  %v1710_v9 = vmul.f32 %v2435_v24, %v1709_v60  ;;  %2444 = vrcp.f32 %v2475_v25 }
 0x30e   :  { %v1672_v61 = vmul.f32 0.6931472, %v2437_v18 }
 0x30f   :  { %v2439_v50 = vpop.eup %2438 }
 0x310   :  { %v2441_v40 = vpop.eup %2440  ;;  %v1660_v38 = vmul.f32 0.6931472, %v2439_v50  ;;  %v1678_v28 = vsel %vm1677_vm14, %v1675_v44, %v1672_v61 }
 0x311   :  { %v2443_v34 = vpop.eup %2442  ;;  %v1719_v19 = vmul.f32 0.6931472, %v2441_v40 }
 0x312   :  { %v1707_v23 = vmul.f32 0.6931472, %v2443_v34  ;;  %v1666_v10 = vsel %vm1665_vm12, %v1663_v63, %v1660_v38 }
 0x313   :  { %v1667_v27 = vadd.f32 %v1666_v10, %v1653_v3  ;;  %v1725_v11 = vsel %vm1724_vm1, %v1722_v26, %v1719_v19  ;;  %v2445_v0 = vpop.eup %2444 }
 0x314   :  { %v1713_v1 = vsel %vm1712_vm13, %v1710_v9, %v1707_v23  ;;  %v1693_v62 = vmul.f32 2.0, %v2445_v0  ;;  %vm1697_vm3 = vweird.f32 %v2445_v0 }
 0x315   :  { %v1714_v41 = vadd.f32 %v1713_v1, %v1652_v43  ;;  %v1679_v39 = vsel %vm1654_vm15, %v1667_v27, %v1678_v28 }
 0x316   :  { %v1680_v2 = vsub.f32 0.0, %v1679_v39  ;;  %v1694_v16 = vsub.f32 1.0, %v1693_v62 }
 0x317   :  { %v1726_v8 = vsel %vm1701_vm2, %v1714_v41, %v1725_v11 }
 0x318   :  { %v1727_v48 = vsel %vm1681_vm0, %v1726_v8, 0.0  ;;  %v1682_v55 = vsel %vm1681_vm0, %v1680_v2, 0.0  ;;  %v1695_v6 = vmul.f32 %v2445_v0, %v1694_v16 }
 0x319   :  { %1728 = vadd.xlane.f32.xlu1 %v1727_v48  ;;  %1683 = vadd.xlane.f32.xlu0 %v1682_v55 }
 0x31a   :  { %v1696_v42 = vadd.f32 %v2445_v0, %v1695_v6 }
 0x31c   :  { %v1698_v47 = vsel %vm1697_vm3, %v2445_v0, %v1696_v42 }
 0x38c   :  { %v1729_v29 = vpop.xlane.xlu1 %1728  ;;  %v1684_v21 = vpop.xlane.xlu0 %1683 }
 0x38d   :  { %v1730_v20 = vrot.slane %v1729_v29, 4  ;;  %v1685_v30 = vrot.slane %v1684_v21, 4 }
 0x38f   :  { %v1731_v32 = vadd.f32 %v1730_v20, %v1729_v29  ;;  %v1686_v33 = vadd.f32 %v1685_v30, %v1684_v21 }
 0x391   :  { %v1732_v7 = vrot.slane %v1731_v32, 2  ;;  %v1687_v3 = vrot.slane %v1686_v33, 2 }
 0x393   :  { %v1733_v35 = vadd.f32 %v1732_v7, %v1731_v32  ;;  %v1688_v13 = vadd.f32 %v1687_v3, %v1686_v33 }
 0x395   :  { %v1689_v43 = vrot.slane %v1688_v13, 1  ;;  %v1734_v36 = vrot.slane %v1733_v35, 1 }
 0x397   :  { %v1690_v45 = vadd.f32 %v1689_v43, %v1688_v13  ;;  %v1735_v51 = vadd.f32 %v1734_v36, %v1733_v35 }
 0x399   :  { %2409 = vpush %v1690_v45 }
 0x39a   :  { %2411 = vpush %v1698_v47 }
 0x39b   :  { %2413 = vpush %v1735_v51 }
 0x3ca   :  { %s2410_s9 = spop %2409 }
 0x3cb   :  { %s2412_s19 = spop %2411 }
 0x3cc   :  { %s1700_s20 = smul.f32 %s2412_s19, %s2410_s9  ;;  %s2414_s21 = spop %2413 }
 0x3cd   :  { %s1745_s22 = smul.f32 %s2414_s21, %s2412_s19 }
 0x3cf   :  { %s1746_s25 = ssub.f32 %s1700_s20, %s1745_s22 }
 0x3d1   :  { %s1747_s28 = ssub.f32 0.0, %s1746_s25 }
 0x3d3   :  { %v1748_v52 = vstv %s1747_s28 }
 0x3d4   :  { %1750 = vst.msk [vmem:[#allocation2] sm:$0x1] %vm1749_vm4, %v1748_v52 }
 0x3d5   :  { %1761 = dma.vmem_to_hbm [thread:$0]  %s1757_s27, 16, %s1759_s3, [#allocation3]  }
 0x3d6   :  { %2471 = dma.done.wait [#allocation3], 16  }
 0x3d7   :  { %2472 = vsyncadd [#allocation3], 4294967280 }
 0x3d8   :  { %1766 = vsyncpa [#allocation3], 1 }

</bundles_post_ra>
